<compile_context>
chip_gen: v6e
topology: v6e:2x2x1
jax: 0.10.0
libtpu: 0.0.40
codegen_flags: <defaults>
</compile_context>

<pallas_src>
import functools
import numpy as np

import jax
import jax.numpy as jnp
from jax import lax
from jax.experimental import pallas as pl
from jax.experimental.pallas import tpu as pltpu

F32 = jnp.float32
BF16 = jnp.bfloat16
HIGHEST = jax.lax.Precision.HIGHEST   # wrapper prep + pure-JAX reference only


# ----------------------------------------------------------------------------
# Fused kernel.  Layout: features on sublanes, (batch-packed) nodes on lanes,
# one group of Bt batch elements per grid step.  Activations are (C, Bt*N).
# ----------------------------------------------------------------------------
def _make_kernel(T, H, D, K, L, To, BtN):
    def kernel(x_ref, h0_ref, sup_ref, et_ref, *rest):
        layer_refs = rest[:4 * L]
        wc_ref = rest[4 * L]
        cb_ref = rest[4 * L + 1]
        out_ref = rest[4 * L + 2]
        cur_ref = rest[4 * L + 3]                 # VMEM scratch (T, H, BtN) f32

        # ---- loop-invariant values (built once per grid step) --------------
        sup = [sup_ref[k] for k in range(K - 1)]  # (BtN, BtN) bf16, block-diag
        ET = et_ref[...]                          # (D, BtN) f32
        # hoisted node-embedding broadcast tiles; sliced to O rows per gate
        # (JAX does not CSE broadcast_in_dim, so do it once, not per timestep).
        ETb = [jnp.broadcast_to(ET[d:d + 1, :], (2 * H, BtN)) for d in range(D)]

        def gconv(xs, w_ref, b_ref, O):
            # xs: (C, BtN) f32.  One support dot per Chebyshev order, then ONE
            # wide (D*O, K*C) x (K*C, BtN) MXU contraction (merged weights).
            xs_b = xs.astype(BF16)
            pieces = [xs_b]                       # k = 0 identity support
            for k in range(K - 1):
                p = jnp.dot(xs_b, sup[k], preferred_element_type=F32)
                pieces.append(p.astype(BF16))
            rhs = jnp.concatenate(pieces, axis=0)                 # (K*C, BtN)
            y = jnp.dot(w_ref[...], rhs, preferred_element_type=F32)  # (D*O, BtN)
            # per-node embedding reduction over D (small VPU loop)
            out = b_ref[...]                                      # (O, BtN) f32
            for d in range(D):
                out = out + ETb[d][:O] * y[d * O:(d + 1) * O, :]
            return out

        for l in range(L):
            wg_ref, wu_ref, bg_ref, bu_ref = layer_refs[4 * l:4 * (l + 1)]

            def step(t, h, l=l, wg_ref=wg_ref, wu_ref=wu_ref,
                     bg_ref=bg_ref, bu_ref=bu_ref):
                # layer 0 reads the (feature-padded) input, deeper layers read
                # the previous layer's outputs stored in cur_ref (read before
                # the same-index write below).
                xt = x_ref[t] if l == 0 else cur_ref[t]           # (Cin, BtN)
                xs = jnp.concatenate([xt, h], axis=0)             # (Cin+H, BtN)
                zr = jax.nn.sigmoid(gconv(xs, wg_ref, bg_ref, 2 * H))
                z, r = zr[:H, :], zr[H:, :]
                cand = jnp.concatenate([xt, z * h], axis=0)
                hc = jnp.tanh(gconv(cand, wu_ref, bu_ref, H))
                h = r * h + (1.0 - r) * hc
                cur_ref[t] = h
                return h

            lax.fori_loop(0, T, step, h0_ref[l])

        # end_conv: Conv2d(T -> To, kernel (1, H)) == ONE matmul over (t, h).
        # (T, H, BtN) -> (T*H, BtN) is layout-trivial when H % 8 == 0.
        cur = cur_ref[...].reshape(T * H, BtN).astype(BF16)
        y = jnp.dot(wc_ref[...], cur, preferred_element_type=F32)  # (To, BtN)
        out_ref[...] = y + cb_ref[...]

    return kernel


# ----------------------------------------------------------------------------
# Wrapper: layout / parameter prep (done once under jit) + single pallas_call.
# ----------------------------------------------------------------------------
def avwdcrnn_forward(x, init_state, node_embeddings, params, cfg):
    B, T, N, Fd = x.shape
    H, K, L = cfg["hidden"], cfg["cheb_k"], cfg["num_layers"]
    D, To = cfg["embed_dim"], cfg["output_window"]
    assert K >= 2, "cheb_k >= 2 (module default); K == 1 degenerates to identity"

    E = node_embeddings.astype(F32)

    # ---- batch packing onto the lane axis ----------------------------------
    Bt = 1 if N >= 128 else max(1, min(128 // N, B))
    G = -(-B // Bt)                      # ceil(B / Bt); for v7x prefer G even
    Bp = G * Bt
    BtN = Bt * N
    Fd_p = ((Fd + 7) // 8) * 8           # layer-0 feature dim -> sublane tile

    # x: (B,T,N,Fd) -> (G, T, Fd_p, Bt*N), lane = b_in_group * N + n
    x_k = jnp.transpose(x.astype(F32), (0, 1, 3, 2))                 # (B,T,Fd,N)
    x_k = jnp.pad(x_k, ((0, Bp - B), (0, 0), (0, Fd_p - Fd), (0, 0)))
    x_k = (x_k.reshape(G, Bt, T, Fd_p, N)
              .transpose(0, 2, 3, 1, 4).reshape(G, T, Fd_p, BtN))

    # init_state: (L,B,N,H) -> (G, L, H, Bt*N)
    h0 = jnp.transpose(init_state.astype(F32), (1, 0, 3, 2))         # (B,L,H,N)
    h0 = jnp.pad(h0, ((0, Bp - B), (0, 0), (0, 0), (0, 0)))
    h0 = (h0.reshape(G, Bt, L, H, N)
            .transpose(0, 2, 3, 1, 4).reshape(G, L, H, BtN))

    # ---- adaptive supports: computed ONCE, f32/HIGHEST, then bf16 for MXU ---
    A = jnp.maximum(jnp.dot(E, E.T, precision=HIGHEST), 0.0)
    S = jax.nn.softmax(A, axis=1)
    sup = [jnp.eye(N, dtype=F32), S]
    for _ in range(2, K):
        sup.append(2.0 * jnp.dot(S, sup[-1], precision=HIGHEST) - sup[-2])
    # transposed supports (right-multiply layout), identity skipped,
    # block-diagonal replicated across the Bt packed batch elements.
    eyeBt = jnp.eye(Bt, dtype=F32)
    sup_bd = jnp.stack([jnp.kron(eyeBt, s.T) for s in sup[1:]], 0).astype(BF16)

    ET_t = jnp.tile(E.T, (1, Bt))                                    # (D, BtN)

    # ---- weights: flattened (D*O, K*(Cin_p+H)) bf16; biases per node, f32 ---
    layer_args = []
    for l in range(L):
        Cin = Fd if l == 0 else H
        Cin_p = Fd_p if l == 0 else H
        lp = params["cells"][l]

        def flat(wp, O, Cin=Cin, Cin_p=Cin_p):
            # wp: (D, K, Cin+H, O) -> pad x-columns to Cin_p so the in-kernel
            # concat([x_pad, h]) lines up, then (D, O, K, Cin_p+H) -> 2-D.
            wx, wh = wp[:, :, :Cin, :], wp[:, :, Cin:, :]
            wx = jnp.pad(wx, ((0, 0), (0, 0), (0, Cin_p - Cin), (0, 0)))
            w = jnp.concatenate([wx, wh], axis=2)
            w = jnp.transpose(w, (0, 3, 1, 2)).reshape(D * O, K * (Cin_p + H))
            return w.astype(BF16)

        wg = flat(lp["gate_wp"], 2 * H)
        wu = flat(lp["upd_wp"], H)
        bg = jnp.tile(jnp.dot(E, lp["gate_bp"], precision=HIGHEST).T, (1, Bt))
        bu = jnp.tile(jnp.dot(E, lp["upd_bp"], precision=HIGHEST).T, (1, Bt))
        layer_args += [wg, wu, bg, bu]

    wc = params["conv_w"][:, :, 0, :].reshape(To, T * H).astype(BF16)
    cb = params["conv_b"].reshape(To, 1).astype(F32)

    inputs = [x_k, h0, sup_bd, ET_t] + layer_args + [wc, cb]

    def const_spec(a):
        zeros = (0,) * a.ndim
        return pl.BlockSpec(a.shape, lambda g: zeros)   # DMA'd into VMEM once

    in_specs = ([pl.BlockSpec((None, T, Fd_p, BtN), lambda g: (g, 0, 0, 0)),
                 pl.BlockSpec((None, L, H, BtN), lambda g: (g, 0, 0, 0))]
                + [const_spec(a) for a in inputs[2:]])

    # explicit VMEM budget: 2x (double-buffer) per input/output block + scratch
    def _nbytes(shape, dtype):
        return int(np.prod(shape)) * jnp.dtype(dtype).itemsize
    blk_bytes = (_nbytes((T, Fd_p, BtN), F32) + _nbytes((L, H, BtN), F32)
                 + _nbytes((To, BtN), F32)
                 + sum(_nbytes(a.shape, a.dtype) for a in inputs[2:]))
    scratch_bytes = _nbytes((T, H, BtN), F32)
    vmem_limit = int(min(max(2 * blk_bytes + scratch_bytes + (8 << 20), 32 << 20),
                         112 << 20))

    out = pl.pallas_call(
        _make_kernel(T, H, D, K, L, To, BtN),
        out_shape=jax.ShapeDtypeStruct((G, To, BtN), F32),
        grid=(G,),
        in_specs=in_specs,
        out_specs=pl.BlockSpec((None, To, BtN), lambda g: (g, 0, 0)),
        scratch_shapes=[pltpu.VMEM((T, H, BtN), F32)],
        compiler_params=pltpu.CompilerParams(
            dimension_semantics=("parallel",),
            vmem_limit_bytes=vmem_limit),
    )(*inputs)                                                     # (G, To, BtN)

    # un-pack lanes -> (B, To, N), then FusionLayer (+ trailing output_dim)
    out = (out.reshape(G, To, Bt, N).transpose(0, 2, 1, 3)
              .reshape(Bp, To, N)[:B])
    return out[..., None] * params["fusion_w"]                     # (B,To,N,OD)


# ----------------------------------------------------------------------------
# Pure-JAX reference (direct translation of the PyTorch module) for validation
# ----------------------------------------------------------------------------
def _avwgcn_ref(x, E, wp, bp, cheb_k):
    N = E.shape[0]
    S = jax.nn.softmax(
        jnp.maximum(jnp.dot(E, E.T, precision=HIGHEST), 0.0), axis=1)
    sup = [jnp.eye(N, dtype=F32), S]
    for _ in range(2, cheb_k):
        sup.append(2.0 * jnp.dot(S, sup[-1], precision=HIGHEST) - sup[-2])
    supports = jnp.stack(sup, 0)
    weights = jnp.einsum("nd,dkio->nkio", E, wp, precision=HIGHEST)
    bias = jnp.dot(E, bp, precision=HIGHEST)
    x_g = jnp.einsum("knm,bmc->bknc", supports, x, precision=HIGHEST)
    x_g = jnp.transpose(x_g, (0, 2, 1, 3))
    return jnp.einsum("bnki,nkio->bno", x_g, weights, precision=HIGHEST) + bias


def _cell_ref(x, state, E, lp, H, cheb_k):
    xs = jnp.concatenate([x, state], axis=-1)
    zr = jax.nn.sigmoid(_avwgcn_ref(xs, E, lp["gate_wp"], lp["gate_bp"], cheb_k))
    z, r = zr[..., :H], zr[..., H:]
    cand = jnp.concatenate([x, z * state], axis=-1)
    hc = jnp.tanh(_avwgcn_ref(cand, E, lp["upd_wp"], lp["upd_bp"], cheb_k))
    return r * state + (1.0 - r) * hc


def forward_ref(x, init_state, E, params, cfg):
    B, T, N, Fd = x.shape
    H, L, K = cfg["hidden"], cfg["num_layers"], cfg["cheb_k"]
    current = x
    for i in range(L):
        state = init_state[i]
        outs = []
        for t in range(T):
            state = _cell_ref(current[:, t], state, E, params["cells"][i], H, K)
            outs.append(state)
        current = jnp.stack(outs, axis=1)
    w = params["conv_w"][:, :, 0, :]                              # (To, T, H)
    conv = jnp.einsum("btnh,oth->bon", current, w, precision=HIGHEST)
    conv = conv + params["conv_b"][None, :, None]
    conv = conv[..., None]                                        # (B, To, N, 1)
    return conv * params["fusion_w"]                              # (B, To, N, OD)


# ----------------------------------------------------------------------------
# Deterministic parameter / input construction
# ----------------------------------------------------------------------------
def init_params(cfg, key):
    N, Fd, H, D = cfg["num_nodes"], cfg["feature_dim"], cfg["hidden"], cfg["embed_dim"]
    L, K = cfg["num_layers"], cfg["cheb_k"]
    To, T, OD = cfg["output_window"], cfg["input_window"], cfg["output_dim"]
    cells = []
    for i in range(L):
        Cin = Fd if i == 0 else H
        key, k1, k2, k3, k4 = jax.random.split(key, 5)
        cells.append(dict(
            gate_wp=0.1 * jax.random.normal(k1, (D, K, Cin + H, 2 * H), F32),
            gate_bp=0.1 * jax.random.normal(k2, (D, 2 * H), F32),
            upd_wp=0.1 * jax.random.normal(k3, (D, K, Cin + H, H), F32),
            upd_bp=0.1 * jax.random.normal(k4, (D, H), F32),
        ))
    key, k5, k6, k7 = jax.random.split(key, 4)
    params = dict(
        cells=cells,
        conv_w=0.1 * jax.random.normal(k5, (To, T, 1, H), F32),
        conv_b=0.1 * jax.random.normal(k6, (To,), F32),
        fusion_w=jax.random.normal(k7, (1, To, N, OD), F32),
    )
    return params, key


if __name__ == "__main__":
    cfg = dict(num_nodes=16, feature_dim=2, hidden=32, embed_dim=8,
               num_layers=2, cheb_k=2, input_window=8, output_window=4,
               output_dim=1, batch=2)

    key = jax.random.PRNGKey(0)
    params, key = init_params(cfg, key)
    key, kx, ks, ke = jax.random.split(key, 4)
    x = jax.random.normal(kx, (cfg["batch"], cfg["input_window"],
                               cfg["num_nodes"], cfg["feature_dim"]), F32)
    init_state = 0.5 * jax.random.normal(
        ks, (cfg["num_layers"], cfg["batch"], cfg["num_nodes"], cfg["hidden"]), F32)
    node_embeddings = 0.5 * jax.random.normal(
        ke, (cfg["num_nodes"], cfg["embed_dim"]), F32)

    fwd = jax.jit(functools.partial(avwdcrnn_forward, cfg=cfg))
    out = jax.block_until_ready(fwd(x, init_state, node_embeddings, params))

    ref = forward_ref(x, init_state, node_embeddings, params, cfg)
    # Tolerance vs the f32(HIGHEST) reference: kernel matmuls use bf16 inputs
    # with f32 accumulation (native MXU path); real algebra bugs show up as
    # O(0.1..1) errors.
    np.testing.assert_allclose(np.asarray(out), np.asarray(ref),
                               rtol=3e-2, atol=3e-2)
    assert out.shape == (cfg["batch"], cfg["output_window"],
                         cfg["num_nodes"], cfg["output_dim"])
    print("KERNEL_OK")
</pallas_src>

<mosaic_0001>
module attributes {stable_mosaic.version = 11 : i64} {
  func.func @kernel(%arg0: i32, %arg1: memref<1x8x8x32xf32, #tpu.memory_space<vmem>>, %arg2: memref<1x2x32x32xf32, #tpu.memory_space<vmem>>, %arg3: memref<1x32x32xbf16, #tpu.memory_space<vmem>>, %arg4: memref<8x32xf32, #tpu.memory_space<vmem>>, %arg5: memref<512x80xbf16, #tpu.memory_space<vmem>>, %arg6: memref<256x80xbf16, #tpu.memory_space<vmem>>, %arg7: memref<64x32xf32, #tpu.memory_space<vmem>>, %arg8: memref<32x32xf32, #tpu.memory_space<vmem>>, %arg9: memref<512x128xbf16, #tpu.memory_space<vmem>>, %arg10: memref<256x128xbf16, #tpu.memory_space<vmem>>, %arg11: memref<64x32xf32, #tpu.memory_space<vmem>>, %arg12: memref<32x32xf32, #tpu.memory_space<vmem>>, %arg13: memref<4x256xbf16, #tpu.memory_space<vmem>>, %arg14: memref<4x1xf32, #tpu.memory_space<vmem>>, %arg15: memref<1x4x32xf32, #tpu.memory_space<vmem>>, %arg16: memref<8x32x32xf32, #tpu.memory_space<vmem>>) attributes {dimension_semantics = [#tpu.dimension_semantics<parallel>], iteration_bounds = array<i64: 1>, scalar_prefetch = 0 : i64, scratch_operands = 1 : i64, tpu.core_type = #tpu.core_type<tc>, window_params = [{transform_indices = @transform_0, window_bounds = array<i64: 1, 8, 8, 32>}, {transform_indices = @transform_1, window_bounds = array<i64: 1, 2, 32, 32>}, {pipeline_mode = #tpu.pipeline_mode<synchronous>, transform_indices = @transform_2, window_bounds = array<i64: 1, 32, 32>}, {pipeline_mode = #tpu.pipeline_mode<synchronous>, transform_indices = @transform_3, window_bounds = array<i64: 8, 32>}, {pipeline_mode = #tpu.pipeline_mode<synchronous>, transform_indices = @transform_4, window_bounds = array<i64: 512, 80>}, {pipeline_mode = #tpu.pipeline_mode<synchronous>, transform_indices = @transform_5, window_bounds = array<i64: 256, 80>}, {pipeline_mode = #tpu.pipeline_mode<synchronous>, transform_indices = @transform_6, window_bounds = array<i64: 64, 32>}, {pipeline_mode = #tpu.pipeline_mode<synchronous>, transform_indices = @transform_7, window_bounds = array<i64: 32, 32>}, {pipeline_mode = #tpu.pipeline_mode<synchronous>, transform_indices = @transform_8, window_bounds = array<i64: 512, 128>}, {pipeline_mode = #tpu.pipeline_mode<synchronous>, transform_indices = @transform_9, window_bounds = array<i64: 256, 128>}, {pipeline_mode = #tpu.pipeline_mode<synchronous>, transform_indices = @transform_10, window_bounds = array<i64: 64, 32>}, {pipeline_mode = #tpu.pipeline_mode<synchronous>, transform_indices = @transform_11, window_bounds = array<i64: 32, 32>}, {pipeline_mode = #tpu.pipeline_mode<synchronous>, transform_indices = @transform_12, window_bounds = array<i64: 4, 256>}, {pipeline_mode = #tpu.pipeline_mode<synchronous>, transform_indices = @transform_13, window_bounds = array<i64: 4, 1>}, {transform_indices = @transform_14, window_bounds = array<i64: 1, 4, 32>}]} {
    %c0 = arith.constant 0 : index
    %c0_0 = arith.constant 0 : index
    %c0_1 = arith.constant 0 : index
    %0 = vector.load %arg3[%c0, %c0_0, %c0_1] : memref<1x32x32xbf16, #tpu.memory_space<vmem>>, vector<1x32x32xbf16>
    %1 = vector.shape_cast %0 : vector<1x32x32xbf16> to vector<32x32xbf16>
    %c0_2 = arith.constant 0 : index
    %c0_3 = arith.constant 0 : index
    %2 = vector.load %arg4[%c0_2, %c0_3] : memref<8x32xf32, #tpu.memory_space<vmem>>, vector<8x32xf32>
    %3 = vector.extract_strided_slice %2 {offsets = [0, 0], sizes = [1, 32], strides = [1, 1]} : vector<8x32xf32> to vector<1x32xf32>
    %4 = vector.shape_cast %3 : vector<1x32xf32> to vector<1x32xf32>
    %5 = vector.broadcast %4 : vector<1x32xf32> to vector<64x32xf32>
    %6 = vector.extract_strided_slice %2 {offsets = [1, 0], sizes = [1, 32], strides = [1, 1]} : vector<8x32xf32> to vector<1x32xf32>
    %7 = vector.shape_cast %6 : vector<1x32xf32> to vector<1x32xf32>
    %8 = vector.broadcast %7 : vector<1x32xf32> to vector<64x32xf32>
    %9 = vector.extract_strided_slice %2 {offsets = [2, 0], sizes = [1, 32], strides = [1, 1]} : vector<8x32xf32> to vector<1x32xf32>
    %10 = vector.shape_cast %9 : vector<1x32xf32> to vector<1x32xf32>
    %11 = vector.broadcast %10 : vector<1x32xf32> to vector<64x32xf32>
    %12 = vector.extract_strided_slice %2 {offsets = [3, 0], sizes = [1, 32], strides = [1, 1]} : vector<8x32xf32> to vector<1x32xf32>
    %13 = vector.shape_cast %12 : vector<1x32xf32> to vector<1x32xf32>
    %14 = vector.broadcast %13 : vector<1x32xf32> to vector<64x32xf32>
    %15 = vector.extract_strided_slice %2 {offsets = [4, 0], sizes = [1, 32], strides = [1, 1]} : vector<8x32xf32> to vector<1x32xf32>
    %16 = vector.shape_cast %15 : vector<1x32xf32> to vector<1x32xf32>
    %17 = vector.broadcast %16 : vector<1x32xf32> to vector<64x32xf32>
    %18 = vector.extract_strided_slice %2 {offsets = [5, 0], sizes = [1, 32], strides = [1, 1]} : vector<8x32xf32> to vector<1x32xf32>
    %19 = vector.shape_cast %18 : vector<1x32xf32> to vector<1x32xf32>
    %20 = vector.broadcast %19 : vector<1x32xf32> to vector<64x32xf32>
    %21 = vector.extract_strided_slice %2 {offsets = [6, 0], sizes = [1, 32], strides = [1, 1]} : vector<8x32xf32> to vector<1x32xf32>
    %22 = vector.shape_cast %21 : vector<1x32xf32> to vector<1x32xf32>
    %23 = vector.broadcast %22 : vector<1x32xf32> to vector<64x32xf32>
    %24 = vector.extract_strided_slice %2 {offsets = [7, 0], sizes = [1, 32], strides = [1, 1]} : vector<8x32xf32> to vector<1x32xf32>
    %25 = vector.shape_cast %24 : vector<1x32xf32> to vector<1x32xf32>
    %26 = vector.broadcast %25 : vector<1x32xf32> to vector<64x32xf32>
    %c0_4 = arith.constant 0 : index
    %c0_5 = arith.constant 0 : index
    %c0_6 = arith.constant 0 : index
    %c0_7 = arith.constant 0 : index
    %27 = vector.load %arg2[%c0_4, %c0_5, %c0_6, %c0_7] : memref<1x2x32x32xf32, #tpu.memory_space<vmem>>, vector<1x1x32x32xf32>
    %28 = vector.shape_cast %27 : vector<1x1x32x32xf32> to vector<32x32xf32>
    %c0_i32 = arith.constant 0 : i32
    %c8_i32 = arith.constant 8 : i32
    %29 = arith.addi %c0_i32, %c8_i32 : i32
    %c1_i32 = arith.constant 1 : i32
    %30 = scf.for %arg17 = %c0_i32 to %29 step %c1_i32 iter_args(%arg18 = %28) -> (vector<32x32xf32>)  : i32 {
      %c0_26 = arith.constant 0 : index
      %46 = arith.index_cast %arg17 : i32 to index
      %c0_27 = arith.constant 0 : index
      %c0_28 = arith.constant 0 : index
      %47 = vector.load %arg1[%c0_26, %46, %c0_27, %c0_28] : memref<1x8x8x32xf32, #tpu.memory_space<vmem>>, vector<1x1x8x32xf32>
      %48 = vector.shape_cast %47 : vector<1x1x8x32xf32> to vector<8x32xf32>
      %49 = tpu.concatenate %48, %arg18 in 0 : vector<8x32xf32>, vector<32x32xf32> -> vector<40x32xf32>
      %50 = arith.truncf %49 : vector<40x32xf32> to vector<40x32xbf16>
      %cst_29 = arith.constant dense<0.000000e+00> : vector<40x32xf32>
      %51 = tpu.matmul %50, %1, %cst_29 {dimension_numbers = #tpu.dot_dimension_numbers<[1], [0], [0], [1], [0, 0, 1, 1], [], []>} : vector<40x32xbf16>, vector<32x32xbf16>, vector<40x32xf32> -> vector<40x32xf32>
      %52 = arith.truncf %51 : vector<40x32xf32> to vector<40x32xbf16>
      %53 = tpu.concatenate %50, %52 in 0 : vector<40x32xbf16>, vector<40x32xbf16> -> vector<80x32xbf16>
      %c0_30 = arith.constant 0 : index
      %c0_31 = arith.constant 0 : index
      %54 = vector.load %arg5[%c0_30, %c0_31] : memref<512x80xbf16, #tpu.memory_space<vmem>>, vector<512x80xbf16>
      %cst_32 = arith.constant dense<0.000000e+00> : vector<512x32xf32>
      %55 = tpu.matmul %54, %53, %cst_32 {dimension_numbers = #tpu.dot_dimension_numbers<[1], [0], [0], [1], [0, 0, 1, 1], [], []>} : vector<512x80xbf16>, vector<80x32xbf16>, vector<512x32xf32> -> vector<512x32xf32>
      %c0_33 = arith.constant 0 : index
      %c0_34 = arith.constant 0 : index
      %56 = vector.load %arg7[%c0_33, %c0_34] : memref<64x32xf32, #tpu.memory_space<vmem>>, vector<64x32xf32>
      %57 = vector.extract_strided_slice %55 {offsets = [0, 0], sizes = [64, 32], strides = [1, 1]} : vector<512x32xf32> to vector<64x32xf32>
      %58 = arith.mulf %5, %57 : vector<64x32xf32>
      %59 = arith.addf %56, %58 : vector<64x32xf32>
      %60 = vector.extract_strided_slice %55 {offsets = [64, 0], sizes = [64, 32], strides = [1, 1]} : vector<512x32xf32> to vector<64x32xf32>
      %61 = arith.mulf %8, %60 : vector<64x32xf32>
      %62 = arith.addf %59, %61 : vector<64x32xf32>
      %63 = vector.extract_strided_slice %55 {offsets = [128, 0], sizes = [64, 32], strides = [1, 1]} : vector<512x32xf32> to vector<64x32xf32>
      %64 = arith.mulf %11, %63 : vector<64x32xf32>
      %65 = arith.addf %62, %64 : vector<64x32xf32>
      %66 = vector.extract_strided_slice %55 {offsets = [192, 0], sizes = [64, 32], strides = [1, 1]} : vector<512x32xf32> to vector<64x32xf32>
      %67 = arith.mulf %14, %66 : vector<64x32xf32>
      %68 = arith.addf %65, %67 : vector<64x32xf32>
      %69 = vector.extract_strided_slice %55 {offsets = [256, 0], sizes = [64, 32], strides = [1, 1]} : vector<512x32xf32> to vector<64x32xf32>
      %70 = arith.mulf %17, %69 : vector<64x32xf32>
      %71 = arith.addf %68, %70 : vector<64x32xf32>
      %72 = vector.extract_strided_slice %55 {offsets = [320, 0], sizes = [64, 32], strides = [1, 1]} : vector<512x32xf32> to vector<64x32xf32>
      %73 = arith.mulf %20, %72 : vector<64x32xf32>
      %74 = arith.addf %71, %73 : vector<64x32xf32>
      %75 = vector.extract_strided_slice %55 {offsets = [384, 0], sizes = [64, 32], strides = [1, 1]} : vector<512x32xf32> to vector<64x32xf32>
      %76 = arith.mulf %23, %75 : vector<64x32xf32>
      %77 = arith.addf %74, %76 : vector<64x32xf32>
      %78 = vector.extract_strided_slice %55 {offsets = [448, 0], sizes = [64, 32], strides = [1, 1]} : vector<512x32xf32> to vector<64x32xf32>
      %79 = arith.mulf %26, %78 : vector<64x32xf32>
      %80 = arith.addf %77, %79 : vector<64x32xf32>
      %81 = arith.negf %80 : vector<64x32xf32>
      %82 = math.exp %81 : vector<64x32xf32>
      %cst_35 = arith.constant 1.000000e+00 : f32
      %83 = vector.broadcast %cst_35 : f32 to vector<64x32xf32>
      %84 = arith.addf %83, %82 : vector<64x32xf32>
      %85 = arith.divf %83, %84 : vector<64x32xf32>
      %86 = vector.extract_strided_slice %85 {offsets = [0, 0], sizes = [32, 32], strides = [1, 1]} : vector<64x32xf32> to vector<32x32xf32>
      %87 = vector.extract_strided_slice %85 {offsets = [32, 0], sizes = [32, 32], strides = [1, 1]} : vector<64x32xf32> to vector<32x32xf32>
      %88 = arith.mulf %86, %arg18 : vector<32x32xf32>
      %89 = tpu.concatenate %48, %88 in 0 : vector<8x32xf32>, vector<32x32xf32> -> vector<40x32xf32>
      %90 = arith.truncf %89 : vector<40x32xf32> to vector<40x32xbf16>
      %cst_36 = arith.constant dense<0.000000e+00> : vector<40x32xf32>
      %91 = tpu.matmul %90, %1, %cst_36 {dimension_numbers = #tpu.dot_dimension_numbers<[1], [0], [0], [1], [0, 0, 1, 1], [], []>} : vector<40x32xbf16>, vector<32x32xbf16>, vector<40x32xf32> -> vector<40x32xf32>
      %92 = arith.truncf %91 : vector<40x32xf32> to vector<40x32xbf16>
      %93 = tpu.concatenate %90, %92 in 0 : vector<40x32xbf16>, vector<40x32xbf16> -> vector<80x32xbf16>
      %c0_37 = arith.constant 0 : index
      %c0_38 = arith.constant 0 : index
      %94 = vector.load %arg6[%c0_37, %c0_38] : memref<256x80xbf16, #tpu.memory_space<vmem>>, vector<256x80xbf16>
      %cst_39 = arith.constant dense<0.000000e+00> : vector<256x32xf32>
      %95 = tpu.matmul %94, %93, %cst_39 {dimension_numbers = #tpu.dot_dimension_numbers<[1], [0], [0], [1], [0, 0, 1, 1], [], []>} : vector<256x80xbf16>, vector<80x32xbf16>, vector<256x32xf32> -> vector<256x32xf32>
      %c0_40 = arith.constant 0 : index
      %c0_41 = arith.constant 0 : index
      %96 = vector.load %arg8[%c0_40, %c0_41] : memref<32x32xf32, #tpu.memory_space<vmem>>, vector<32x32xf32>
      %97 = vector.extract_strided_slice %5 {offsets = [0, 0], sizes = [32, 32], strides = [1, 1]} : vector<64x32xf32> to vector<32x32xf32>
      %98 = vector.extract_strided_slice %95 {offsets = [0, 0], sizes = [32, 32], strides = [1, 1]} : vector<256x32xf32> to vector<32x32xf32>
      %99 = arith.mulf %97, %98 : vector<32x32xf32>
      %100 = arith.addf %96, %99 : vector<32x32xf32>
      %101 = vector.extract_strided_slice %8 {offsets = [0, 0], sizes = [32, 32], strides = [1, 1]} : vector<64x32xf32> to vector<32x32xf32>
      %102 = vector.extract_strided_slice %95 {offsets = [32, 0], sizes = [32, 32], strides = [1, 1]} : vector<256x32xf32> to vector<32x32xf32>
      %103 = arith.mulf %101, %102 : vector<32x32xf32>
      %104 = arith.addf %100, %103 : vector<32x32xf32>
      %105 = vector.extract_strided_slice %11 {offsets = [0, 0], sizes = [32, 32], strides = [1, 1]} : vector<64x32xf32> to vector<32x32xf32>
      %106 = vector.extract_strided_slice %95 {offsets = [64, 0], sizes = [32, 32], strides = [1, 1]} : vector<256x32xf32> to vector<32x32xf32>
      %107 = arith.mulf %105, %106 : vector<32x32xf32>
      %108 = arith.addf %104, %107 : vector<32x32xf32>
      %109 = vector.extract_strided_slice %14 {offsets = [0, 0], sizes = [32, 32], strides = [1, 1]} : vector<64x32xf32> to vector<32x32xf32>
      %110 = vector.extract_strided_slice %95 {offsets = [96, 0], sizes = [32, 32], strides = [1, 1]} : vector<256x32xf32> to vector<32x32xf32>
      %111 = arith.mulf %109, %110 : vector<32x32xf32>
      %112 = arith.addf %108, %111 : vector<32x32xf32>
      %113 = vector.extract_strided_slice %17 {offsets = [0, 0], sizes = [32, 32], strides = [1, 1]} : vector<64x32xf32> to vector<32x32xf32>
      %114 = vector.extract_strided_slice %95 {offsets = [128, 0], sizes = [32, 32], strides = [1, 1]} : vector<256x32xf32> to vector<32x32xf32>
      %115 = arith.mulf %113, %114 : vector<32x32xf32>
      %116 = arith.addf %112, %115 : vector<32x32xf32>
      %117 = vector.extract_strided_slice %20 {offsets = [0, 0], sizes = [32, 32], strides = [1, 1]} : vector<64x32xf32> to vector<32x32xf32>
      %118 = vector.extract_strided_slice %95 {offsets = [160, 0], sizes = [32, 32], strides = [1, 1]} : vector<256x32xf32> to vector<32x32xf32>
      %119 = arith.mulf %117, %118 : vector<32x32xf32>
      %120 = arith.addf %116, %119 : vector<32x32xf32>
      %121 = vector.extract_strided_slice %23 {offsets = [0, 0], sizes = [32, 32], strides = [1, 1]} : vector<64x32xf32> to vector<32x32xf32>
      %122 = vector.extract_strided_slice %95 {offsets = [192, 0], sizes = [32, 32], strides = [1, 1]} : vector<256x32xf32> to vector<32x32xf32>
      %123 = arith.mulf %121, %122 : vector<32x32xf32>
      %124 = arith.addf %120, %123 : vector<32x32xf32>
      %125 = vector.extract_strided_slice %26 {offsets = [0, 0], sizes = [32, 32], strides = [1, 1]} : vector<64x32xf32> to vector<32x32xf32>
      %126 = vector.extract_strided_slice %95 {offsets = [224, 0], sizes = [32, 32], strides = [1, 1]} : vector<256x32xf32> to vector<32x32xf32>
      %127 = arith.mulf %125, %126 : vector<32x32xf32>
      %128 = arith.addf %124, %127 : vector<32x32xf32>
      %129 = math.tanh %128 : vector<32x32xf32>
      %130 = arith.mulf %87, %arg18 : vector<32x32xf32>
      %cst_42 = arith.constant 1.000000e+00 : f32
      %131 = vector.broadcast %cst_42 : f32 to vector<32x32xf32>
      %132 = arith.subf %131, %87 : vector<32x32xf32>
      %133 = arith.mulf %132, %129 : vector<32x32xf32>
      %134 = arith.addf %130, %133 : vector<32x32xf32>
      %135 = arith.index_cast %arg17 : i32 to index
      %c0_43 = arith.constant 0 : index
      %c0_44 = arith.constant 0 : index
      %136 = vector.load %arg16[%135, %c0_43, %c0_44] : memref<8x32x32xf32, #tpu.memory_space<vmem>>, vector<1x32x32xf32>
      %137 = vector.shape_cast %136 : vector<1x32x32xf32> to vector<32x32xf32>
      %138 = vector.shape_cast %134 : vector<32x32xf32> to vector<1x32x32xf32>
      tpu.vector_store %arg16[%135, %c0_43, %c0_44], %138 {strides = array<i32>} : memref<8x32x32xf32, #tpu.memory_space<vmem>>, vector<1x32x32xf32>,
      scf.yield %134 : vector<32x32xf32>
    }
    %c8_i32_8 = arith.constant 8 : i32
    %c0_9 = arith.constant 0 : index
    %c1 = arith.constant 1 : index
    %c0_10 = arith.constant 0 : index
    %c0_11 = arith.constant 0 : index
    %31 = vector.load %arg2[%c0_9, %c1, %c0_10, %c0_11] : memref<1x2x32x32xf32, #tpu.memory_space<vmem>>, vector<1x1x32x32xf32>
    %32 = vector.shape_cast %31 : vector<1x1x32x32xf32> to vector<32x32xf32>
    %c0_i32_12 = arith.constant 0 : i32
    %c8_i32_13 = arith.constant 8 : i32
    %33 = arith.addi %c0_i32_12, %c8_i32_13 : i32
    %c1_i32_14 = arith.constant 1 : i32
    %34 = scf.for %arg17 = %c0_i32_12 to %33 step %c1_i32_14 iter_args(%arg18 = %32) -> (vector<32x32xf32>)  : i32 {
      %46 = arith.index_cast %arg17 : i32 to index
      %c0_26 = arith.constant 0 : index
      %c0_27 = arith.constant 0 : index
      %47 = vector.load %arg16[%46, %c0_26, %c0_27] : memref<8x32x32xf32, #tpu.memory_space<vmem>>, vector<1x32x32xf32>
      %48 = vector.shape_cast %47 : vector<1x32x32xf32> to vector<32x32xf32>
      %49 = tpu.concatenate %48, %arg18 in 0 : vector<32x32xf32>, vector<32x32xf32> -> vector<64x32xf32>
      %50 = arith.truncf %49 : vector<64x32xf32> to vector<64x32xbf16>
      %cst_28 = arith.constant dense<0.000000e+00> : vector<64x32xf32>
      %51 = tpu.matmul %50, %1, %cst_28 {dimension_numbers = #tpu.dot_dimension_numbers<[1], [0], [0], [1], [0, 0, 1, 1], [], []>} : vector<64x32xbf16>, vector<32x32xbf16>, vector<64x32xf32> -> vector<64x32xf32>
      %52 = arith.truncf %51 : vector<64x32xf32> to vector<64x32xbf16>
      %53 = tpu.concatenate %50, %52 in 0 : vector<64x32xbf16>, vector<64x32xbf16> -> vector<128x32xbf16>
      %c0_29 = arith.constant 0 : index
      %c0_30 = arith.constant 0 : index
      %54 = vector.load %arg9[%c0_29, %c0_30] : memref<512x128xbf16, #tpu.memory_space<vmem>>, vector<512x128xbf16>
      %cst_31 = arith.constant dense<0.000000e+00> : vector<512x32xf32>
      %55 = tpu.matmul %54, %53, %cst_31 {dimension_numbers = #tpu.dot_dimension_numbers<[1], [0], [0], [1], [0, 0, 1, 1], [], []>} : vector<512x128xbf16>, vector<128x32xbf16>, vector<512x32xf32> -> vector<512x32xf32>
      %c0_32 = arith.constant 0 : index
      %c0_33 = arith.constant 0 : index
      %56 = vector.load %arg11[%c0_32, %c0_33] : memref<64x32xf32, #tpu.memory_space<vmem>>, vector<64x32xf32>
      %57 = vector.extract_strided_slice %55 {offsets = [0, 0], sizes = [64, 32], strides = [1, 1]} : vector<512x32xf32> to vector<64x32xf32>
      %58 = arith.mulf %5, %57 : vector<64x32xf32>
      %59 = arith.addf %56, %58 : vector<64x32xf32>
      %60 = vector.extract_strided_slice %55 {offsets = [64, 0], sizes = [64, 32], strides = [1, 1]} : vector<512x32xf32> to vector<64x32xf32>
      %61 = arith.mulf %8, %60 : vector<64x32xf32>
      %62 = arith.addf %59, %61 : vector<64x32xf32>
      %63 = vector.extract_strided_slice %55 {offsets = [128, 0], sizes = [64, 32], strides = [1, 1]} : vector<512x32xf32> to vector<64x32xf32>
      %64 = arith.mulf %11, %63 : vector<64x32xf32>
      %65 = arith.addf %62, %64 : vector<64x32xf32>
      %66 = vector.extract_strided_slice %55 {offsets = [192, 0], sizes = [64, 32], strides = [1, 1]} : vector<512x32xf32> to vector<64x32xf32>
      %67 = arith.mulf %14, %66 : vector<64x32xf32>
      %68 = arith.addf %65, %67 : vector<64x32xf32>
      %69 = vector.extract_strided_slice %55 {offsets = [256, 0], sizes = [64, 32], strides = [1, 1]} : vector<512x32xf32> to vector<64x32xf32>
      %70 = arith.mulf %17, %69 : vector<64x32xf32>
      %71 = arith.addf %68, %70 : vector<64x32xf32>
      %72 = vector.extract_strided_slice %55 {offsets = [320, 0], sizes = [64, 32], strides = [1, 1]} : vector<512x32xf32> to vector<64x32xf32>
      %73 = arith.mulf %20, %72 : vector<64x32xf32>
      %74 = arith.addf %71, %73 : vector<64x32xf32>
      %75 = vector.extract_strided_slice %55 {offsets = [384, 0], sizes = [64, 32], strides = [1, 1]} : vector<512x32xf32> to vector<64x32xf32>
      %76 = arith.mulf %23, %75 : vector<64x32xf32>
      %77 = arith.addf %74, %76 : vector<64x32xf32>
      %78 = vector.extract_strided_slice %55 {offsets = [448, 0], sizes = [64, 32], strides = [1, 1]} : vector<512x32xf32> to vector<64x32xf32>
      %79 = arith.mulf %26, %78 : vector<64x32xf32>
      %80 = arith.addf %77, %79 : vector<64x32xf32>
      %81 = arith.negf %80 : vector<64x32xf32>
      %82 = math.exp %81 : vector<64x32xf32>
      %cst_34 = arith.constant 1.000000e+00 : f32
      %83 = vector.broadcast %cst_34 : f32 to vector<64x32xf32>
      %84 = arith.addf %83, %82 : vector<64x32xf32>
      %85 = arith.divf %83, %84 : vector<64x32xf32>
      %86 = vector.extract_strided_slice %85 {offsets = [0, 0], sizes = [32, 32], strides = [1, 1]} : vector<64x32xf32> to vector<32x32xf32>
      %87 = vector.extract_strided_slice %85 {offsets = [32, 0], sizes = [32, 32], strides = [1, 1]} : vector<64x32xf32> to vector<32x32xf32>
      %88 = arith.mulf %86, %arg18 : vector<32x32xf32>
      %89 = tpu.concatenate %48, %88 in 0 : vector<32x32xf32>, vector<32x32xf32> -> vector<64x32xf32>
      %90 = arith.truncf %89 : vector<64x32xf32> to vector<64x32xbf16>
      %cst_35 = arith.constant dense<0.000000e+00> : vector<64x32xf32>
      %91 = tpu.matmul %90, %1, %cst_35 {dimension_numbers = #tpu.dot_dimension_numbers<[1], [0], [0], [1], [0, 0, 1, 1], [], []>} : vector<64x32xbf16>, vector<32x32xbf16>, vector<64x32xf32> -> vector<64x32xf32>
      %92 = arith.truncf %91 : vector<64x32xf32> to vector<64x32xbf16>
      %93 = tpu.concatenate %90, %92 in 0 : vector<64x32xbf16>, vector<64x32xbf16> -> vector<128x32xbf16>
      %c0_36 = arith.constant 0 : index
      %c0_37 = arith.constant 0 : index
      %94 = vector.load %arg10[%c0_36, %c0_37] : memref<256x128xbf16, #tpu.memory_space<vmem>>, vector<256x128xbf16>
      %cst_38 = arith.constant dense<0.000000e+00> : vector<256x32xf32>
      %95 = tpu.matmul %94, %93, %cst_38 {dimension_numbers = #tpu.dot_dimension_numbers<[1], [0], [0], [1], [0, 0, 1, 1], [], []>} : vector<256x128xbf16>, vector<128x32xbf16>, vector<256x32xf32> -> vector<256x32xf32>
      %c0_39 = arith.constant 0 : index
      %c0_40 = arith.constant 0 : index
      %96 = vector.load %arg12[%c0_39, %c0_40] : memref<32x32xf32, #tpu.memory_space<vmem>>, vector<32x32xf32>
      %97 = vector.extract_strided_slice %5 {offsets = [0, 0], sizes = [32, 32], strides = [1, 1]} : vector<64x32xf32> to vector<32x32xf32>
      %98 = vector.extract_strided_slice %95 {offsets = [0, 0], sizes = [32, 32], strides = [1, 1]} : vector<256x32xf32> to vector<32x32xf32>
      %99 = arith.mulf %97, %98 : vector<32x32xf32>
      %100 = arith.addf %96, %99 : vector<32x32xf32>
      %101 = vector.extract_strided_slice %8 {offsets = [0, 0], sizes = [32, 32], strides = [1, 1]} : vector<64x32xf32> to vector<32x32xf32>
      %102 = vector.extract_strided_slice %95 {offsets = [32, 0], sizes = [32, 32], strides = [1, 1]} : vector<256x32xf32> to vector<32x32xf32>
      %103 = arith.mulf %101, %102 : vector<32x32xf32>
      %104 = arith.addf %100, %103 : vector<32x32xf32>
      %105 = vector.extract_strided_slice %11 {offsets = [0, 0], sizes = [32, 32], strides = [1, 1]} : vector<64x32xf32> to vector<32x32xf32>
      %106 = vector.extract_strided_slice %95 {offsets = [64, 0], sizes = [32, 32], strides = [1, 1]} : vector<256x32xf32> to vector<32x32xf32>
      %107 = arith.mulf %105, %106 : vector<32x32xf32>
      %108 = arith.addf %104, %107 : vector<32x32xf32>
      %109 = vector.extract_strided_slice %14 {offsets = [0, 0], sizes = [32, 32], strides = [1, 1]} : vector<64x32xf32> to vector<32x32xf32>
      %110 = vector.extract_strided_slice %95 {offsets = [96, 0], sizes = [32, 32], strides = [1, 1]} : vector<256x32xf32> to vector<32x32xf32>
      %111 = arith.mulf %109, %110 : vector<32x32xf32>
      %112 = arith.addf %108, %111 : vector<32x32xf32>
      %113 = vector.extract_strided_slice %17 {offsets = [0, 0], sizes = [32, 32], strides = [1, 1]} : vector<64x32xf32> to vector<32x32xf32>
      %114 = vector.extract_strided_slice %95 {offsets = [128, 0], sizes = [32, 32], strides = [1, 1]} : vector<256x32xf32> to vector<32x32xf32>
      %115 = arith.mulf %113, %114 : vector<32x32xf32>
      %116 = arith.addf %112, %115 : vector<32x32xf32>
      %117 = vector.extract_strided_slice %20 {offsets = [0, 0], sizes = [32, 32], strides = [1, 1]} : vector<64x32xf32> to vector<32x32xf32>
      %118 = vector.extract_strided_slice %95 {offsets = [160, 0], sizes = [32, 32], strides = [1, 1]} : vector<256x32xf32> to vector<32x32xf32>
      %119 = arith.mulf %117, %118 : vector<32x32xf32>
      %120 = arith.addf %116, %119 : vector<32x32xf32>
      %121 = vector.extract_strided_slice %23 {offsets = [0, 0], sizes = [32, 32], strides = [1, 1]} : vector<64x32xf32> to vector<32x32xf32>
      %122 = vector.extract_strided_slice %95 {offsets = [192, 0], sizes = [32, 32], strides = [1, 1]} : vector<256x32xf32> to vector<32x32xf32>
      %123 = arith.mulf %121, %122 : vector<32x32xf32>
      %124 = arith.addf %120, %123 : vector<32x32xf32>
      %125 = vector.extract_strided_slice %26 {offsets = [0, 0], sizes = [32, 32], strides = [1, 1]} : vector<64x32xf32> to vector<32x32xf32>
      %126 = vector.extract_strided_slice %95 {offsets = [224, 0], sizes = [32, 32], strides = [1, 1]} : vector<256x32xf32> to vector<32x32xf32>
      %127 = arith.mulf %125, %126 : vector<32x32xf32>
      %128 = arith.addf %124, %127 : vector<32x32xf32>
      %129 = math.tanh %128 : vector<32x32xf32>
      %130 = arith.mulf %87, %arg18 : vector<32x32xf32>
      %cst_41 = arith.constant 1.000000e+00 : f32
      %131 = vector.broadcast %cst_41 : f32 to vector<32x32xf32>
      %132 = arith.subf %131, %87 : vector<32x32xf32>
      %133 = arith.mulf %132, %129 : vector<32x32xf32>
      %134 = arith.addf %130, %133 : vector<32x32xf32>
      %135 = arith.index_cast %arg17 : i32 to index
      %c0_42 = arith.constant 0 : index
      %c0_43 = arith.constant 0 : index
      %136 = vector.load %arg16[%135, %c0_42, %c0_43] : memref<8x32x32xf32, #tpu.memory_space<vmem>>, vector<1x32x32xf32>
      %137 = vector.shape_cast %136 : vector<1x32x32xf32> to vector<32x32xf32>
      %138 = vector.shape_cast %134 : vector<32x32xf32> to vector<1x32x32xf32>
      tpu.vector_store %arg16[%135, %c0_42, %c0_43], %138 {strides = array<i32>} : memref<8x32x32xf32, #tpu.memory_space<vmem>>, vector<1x32x32xf32>,
      scf.yield %134 : vector<32x32xf32>
    }
    %c8_i32_15 = arith.constant 8 : i32
    %c0_16 = arith.constant 0 : index
    %c0_17 = arith.constant 0 : index
    %c0_18 = arith.constant 0 : index
    %35 = vector.load %arg16[%c0_16, %c0_17, %c0_18] : memref<8x32x32xf32, #tpu.memory_space<vmem>>, vector<8x32x32xf32>
    %36 = vector.shape_cast %35 : vector<8x32x32xf32> to vector<256x32xf32>
    %37 = arith.truncf %36 : vector<256x32xf32> to vector<256x32xbf16>
    %c0_19 = arith.constant 0 : index
    %c0_20 = arith.constant 0 : index
    %38 = vector.load %arg13[%c0_19, %c0_20] : memref<4x256xbf16, #tpu.memory_space<vmem>>, vector<4x256xbf16>
    %cst = arith.constant dense<0.000000e+00> : vector<4x32xf32>
    %39 = tpu.matmul %38, %37, %cst {dimension_numbers = #tpu.dot_dimension_numbers<[1], [0], [0], [1], [0, 0, 1, 1], [], []>} : vector<4x256xbf16>, vector<256x32xbf16>, vector<4x32xf32> -> vector<4x32xf32>
    %c0_21 = arith.constant 0 : index
    %c0_22 = arith.constant 0 : index
    %40 = vector.load %arg14[%c0_21, %c0_22] : memref<4x1xf32, #tpu.memory_space<vmem>>, vector<4x1xf32>
    %41 = vector.broadcast %40 : vector<4x1xf32> to vector<4x32xf32>
    %42 = arith.addf %39, %41 : vector<4x32xf32>
    %c0_23 = arith.constant 0 : index
    %c0_24 = arith.constant 0 : index
    %c0_25 = arith.constant 0 : index
    %43 = vector.load %arg15[%c0_23, %c0_24, %c0_25] : memref<1x4x32xf32, #tpu.memory_space<vmem>>, vector<1x4x32xf32>
    %44 = vector.shape_cast %43 : vector<1x4x32xf32> to vector<4x32xf32>
    %45 = vector.shape_cast %42 : vector<4x32xf32> to vector<1x4x32xf32>
    tpu.vector_store %arg15[%c0_23, %c0_24, %c0_25], %45 {strides = array<i32>} : memref<1x4x32xf32, #tpu.memory_space<vmem>>, vector<1x4x32xf32>,
    return
  }
  func.func @transform_0(%arg0: i32) -> (i32, i32, i32, i32) {
    %c0_i32 = arith.constant 0 : i32
    %c0_i32_0 = arith.constant 0 : i32
    %c0_i32_1 = arith.constant 0 : i32
    %c0_i32_2 = arith.constant 0 : i32
    return %arg0, %c0_i32, %c0_i32_0, %c0_i32_1 : i32, i32, i32, i32
  }
  func.func @transform_1(%arg0: i32) -> (i32, i32, i32, i32) {
    %c0_i32 = arith.constant 0 : i32
    %c0_i32_0 = arith.constant 0 : i32
    %c0_i32_1 = arith.constant 0 : i32
    %c0_i32_2 = arith.constant 0 : i32
    return %arg0, %c0_i32, %c0_i32_0, %c0_i32_1 : i32, i32, i32, i32
  }
  func.func @transform_2(%arg0: i32) -> (i32, i32, i32) {
    %c0_i32 = arith.constant 0 : i32
    %c0_i32_0 = arith.constant 0 : i32
    %c0_i32_1 = arith.constant 0 : i32
    %c0_i32_2 = arith.constant 0 : i32
    return %c0_i32, %c0_i32_0, %c0_i32_1 : i32, i32, i32
  }
  func.func @transform_3(%arg0: i32) -> (i32, i32) {
    %c0_i32 = arith.constant 0 : i32
    %c0_i32_0 = arith.constant 0 : i32
    %c0_i32_1 = arith.constant 0 : i32
    return %c0_i32, %c0_i32_0 : i32, i32
  }
  func.func @transform_4(%arg0: i32) -> (i32, i32) {
    %c0_i32 = arith.constant 0 : i32
    %c0_i32_0 = arith.constant 0 : i32
    %c0_i32_1 = arith.constant 0 : i32
    return %c0_i32, %c0_i32_0 : i32, i32
  }
  func.func @transform_5(%arg0: i32) -> (i32, i32) {
    %c0_i32 = arith.constant 0 : i32
    %c0_i32_0 = arith.constant 0 : i32
    %c0_i32_1 = arith.constant 0 : i32
    return %c0_i32, %c0_i32_0 : i32, i32
  }
  func.func @transform_6(%arg0: i32) -> (i32, i32) {
    %c0_i32 = arith.constant 0 : i32
    %c0_i32_0 = arith.constant 0 : i32
    %c0_i32_1 = arith.constant 0 : i32
    return %c0_i32, %c0_i32_0 : i32, i32
  }
  func.func @transform_7(%arg0: i32) -> (i32, i32) {
    %c0_i32 = arith.constant 0 : i32
    %c0_i32_0 = arith.constant 0 : i32
    %c0_i32_1 = arith.constant 0 : i32
    return %c0_i32, %c0_i32_0 : i32, i32
  }
  func.func @transform_8(%arg0: i32) -> (i32, i32) {
    %c0_i32 = arith.constant 0 : i32
    %c0_i32_0 = arith.constant 0 : i32
    %c0_i32_1 = arith.constant 0 : i32
    return %c0_i32, %c0_i32_0 : i32, i32
  }
  func.func @transform_9(%arg0: i32) -> (i32, i32) {
    %c0_i32 = arith.constant 0 : i32
    %c0_i32_0 = arith.constant 0 : i32
    %c0_i32_1 = arith.constant 0 : i32
    return %c0_i32, %c0_i32_0 : i32, i32
  }
  func.func @transform_10(%arg0: i32) -> (i32, i32) {
    %c0_i32 = arith.constant 0 : i32
    %c0_i32_0 = arith.constant 0 : i32
    %c0_i32_1 = arith.constant 0 : i32
    return %c0_i32, %c0_i32_0 : i32, i32
  }
  func.func @transform_11(%arg0: i32) -> (i32, i32) {
    %c0_i32 = arith.constant 0 : i32
    %c0_i32_0 = arith.constant 0 : i32
    %c0_i32_1 = arith.constant 0 : i32
    return %c0_i32, %c0_i32_0 : i32, i32
  }
  func.func @transform_12(%arg0: i32) -> (i32, i32) {
    %c0_i32 = arith.constant 0 : i32
    %c0_i32_0 = arith.constant 0 : i32
    %c0_i32_1 = arith.constant 0 : i32
    return %c0_i32, %c0_i32_0 : i32, i32
  }
  func.func @transform_13(%arg0: i32) -> (i32, i32) {
    %c0_i32 = arith.constant 0 : i32
    %c0_i32_0 = arith.constant 0 : i32
    %c0_i32_1 = arith.constant 0 : i32
    return %c0_i32, %c0_i32_0 : i32, i32
  }
  func.func @transform_14(%arg0: i32) -> (i32, i32, i32) {
    %c0_i32 = arith.constant 0 : i32
    %c0_i32_0 = arith.constant 0 : i32
    %c0_i32_1 = arith.constant 0 : i32
    return %arg0, %c0_i32, %c0_i32_0 : i32, i32, i32
  }
}

</mosaic_0001>

<bundles_post_ra>
// kernel: tile.29
= control target key start
LH: loop header
LB: loop body
LE: loop exit
PB: predicated region body
PF: predicated region fallthrough
CT: control target
= control target key end

     0   :  { %vm43_vm0 = vcmask 1047556   ;;  %vm45_vm1 = vcmask 130048   ;;  %vm55_vm2 = vcmask 261248   ;;  %s112_s0 = inlined_call_operand.vmem [shape: f32[8,2,16], index: 0, kind: input, shape index: {}]   ;;  %s113_s1 = inlined_call_operand.vmem [shape: f32[8,32], index: 1, kind: output, shape index: {}]  }
   0x1   :  { %v63_v0 = vld [vmem:[%s112_s0 + $0xe] sm:$0x3]  ;;  %v64_v1 = vld [vmem:[%s112_s0 + $0xc] sm:$0x3]  ;;  %v65_v2 = vld [vmem:[%s112_s0 + $0xa] sm:$0x3] }
   0x2   :  { %9 = vst [vmem:[#allocation0 + $0x38] sm:$0x3] %v63_v0  ;;  %14 = vst [vmem:[#allocation0 + $0x30] sm:$0x3] %v64_v1  ;;  %v66_v3 = vld [vmem:[%s112_s0 + $0x8] sm:$0x3] }
   0x3   :  { %19 = vst [vmem:[#allocation0 + $0x28] sm:$0x3] %v65_v2  ;;  %v67_v4 = vld [vmem:[%s112_s0 + $0x6] sm:$0x3]  ;;  %v68_v5 = vld [vmem:[%s112_s0 + $0x4] sm:$0x3] }
   0x4   :  { %24 = vst [vmem:[#allocation0 + $0x20] sm:$0x3] %v66_v3  ;;  %29 = vst [vmem:[#allocation0 + $0x18] sm:$0x3] %v67_v4  ;;  %v69_v6 = vld [vmem:[%s112_s0 + $0x2] sm:$0x3] }
   0x5   :  { %34 = vst [vmem:[#allocation0 + $0x10] sm:$0x3] %v68_v5  ;;  %v39_v7 = vld [vmem:[%s112_s0] sm:$0x3]  ;;  %38 = vst [vmem:[#allocation0 + $0x8] sm:$0x3] %v69_v6 }
   0x6   :  { %40 = vst [vmem:[#allocation0] sm:$0x3] %v39_v7  ;;  %s71_s0 = smov 16  }
   0xb   :  { %v42_v8 = vld [vmem:[#allocation0] ss:$8 sm:$0xf0]   ;;  %v50_v9 = vld [vmem:[#allocation0 + $0x1] ss:$8 sm:$0xf0]  }
   0xd   :  { %v41_v10 = vld [vmem:[#allocation0] ss:$8 sm:$0xf]   ;;  %v48_v11 = vld [vmem:[#allocation0 + $0x1] ss:$8 sm:$0xf]  }
   0xe   :  { %v44_v12 = vsel %vm43_vm0, %v42_v8, %v41_v10  ;;  %v52_v13 = vsel %vm43_vm0, %v50_v9, %v48_v11 }
   0xf   :  { %53 = vrot.lane.b32.xlu0 %v52_v13, %s71_s0  ;;  %46 = vst.msk [vmem:[%s113_s1] sm:$0xff] %vm45_vm1, %v44_v12  }
  0x81   :  { %v54_v14 = vpop.permute.xlu0 %53  }
  0x82   :  { %56 = vst.msk [vmem:[%s113_s1] sm:$0xff] %vm55_vm2, %v54_v14  }

// kernel: avwdcrnn_forward.1
= control target key start
LH: loop header
LB: loop body
LE: loop exit
PB: predicated region body
PF: predicated region fallthrough
CT: control target
= control target key end

     0   :  { %v53_v0 = vlaneseq  ;;  %s4977_s0 = inlined_call_operand.vmem [shape: f32[1,8,8,32], index: 0, kind: input, shape index: {}]   ;;  %s4978_s1 = inlined_call_operand.vmem [shape: f32[1,2,32,32], index: 1, kind: input, shape index: {}]   ;;  %s4979_s2 = inlined_call_operand.vmem [shape: bf16[1,32,32], index: 2, kind: input, shape index: {}]   ;;  %s4980_s3 = inlined_call_operand.vmem [shape: f32[8,32], index: 3, kind: input, shape index: {}]   ;;  %s4981_s4 = inlined_call_operand.vmem [shape: bf16[512,80], index: 4, kind: input, shape index: {}]   ;;  %s4982_s5 = inlined_call_operand.vmem [shape: bf16[256,80], index: 5, kind: input, shape index: {}]   ;;  %s4983_s6 = inlined_call_operand.vmem [shape: f32[64,32], index: 6, kind: input, shape index: {}]   ;;  %s4984_s7 = inlined_call_operand.vmem [shape: f32[32,32], index: 7, kind: input, shape index: {}]   ;;  %s4985_s8 = inlined_call_operand.vmem [shape: bf16[512,128], index: 8, kind: input, shape index: {}]   ;;  %s4986_s9 = inlined_call_operand.vmem [shape: bf16[256,128], index: 9, kind: input, shape index: {}]   ;;  %s4987_s10 = inlined_call_operand.vmem [shape: f32[64,32], index: 10, kind: input, shape index: {}]   ;;  %s4988_s11 = inlined_call_operand.vmem [shape: f32[32,32], index: 11, kind: input, shape index: {}]   ;;  %s4989_s12 = inlined_call_operand.vmem [shape: bf16[4,256], index: 12, kind: input, shape index: {}]   ;;  %s4990_s13 = inlined_call_operand.vmem [shape: f32[4,1], index: 13, kind: input, shape index: {}]   ;;  %s4991_s14 = inlined_call_operand.vmem [shape: f32[1,4,32], index: 14, kind: output, shape index: {}]  }
   0x1   :  { %v4059_v1 = vld [vmem:[%s4979_s2] sm:$0xf]  ;;  %v4064_v2 = vld [vmem:[%s4979_s2 + $0x4] sm:$0xf]  ;;  %v4069_v3 = vld [vmem:[%s4979_s2 + $0x8] sm:$0xf] }
   0x2   :  { %v4074_v4 = vld [vmem:[%s4979_s2 + $0xc] sm:$0xf]  ;;  %v52_v5 = vld [vmem:[%s4980_s3] sm:$0xff]  ;;  %v54_v6 = vshrl.u32 %v53_v0, 7  ;;  %v87_v9 = vld [vmem:[%s4978_s1 + $0x10] sm:$0xff]   ;;  %s4115_s3 = smov 0  }
   0x3   :  { %v85_v7 = vld [vmem:[%s4978_s1] sm:$0xff]   ;;  %v86_v8 = vld [vmem:[%s4978_s1 + $0x8] sm:$0xff]   ;;  %v88_v10 = vld [vmem:[%s4978_s1 + $0x18] sm:$0xff]  }
   0x4   :  { %v55_v11 = vsub.s32 0, %v54_v6  ;;  %v59_v12 = vsub.s32 1, %v54_v6  ;;  %v63_v13 = vsub.s32 2, %v54_v6  ;;  %v67_v14 = vsub.s32 3, %v54_v6 }
   0x5   :  { %v71_v15 = vsub.s32 4, %v54_v6  ;;  %v75_v16 = vsub.s32 5, %v54_v6  ;;  %v79_v17 = vsub.s32 6, %v54_v6  ;;  %v83_v18 = vsub.s32 7, %v54_v6 }
   0x6   :  { %v4091_v19 = vrot.slane %v52_v5, %v55_v11  ;;  %v4093_v20 = vrot.slane %v52_v5, %v59_v12  ;;  %v4095_v21 = vrot.slane %v52_v5, %v63_v13  ;;  %v4097_v22 = vrot.slane %v52_v5, %v67_v14 }
   0x7   :  { %v4099_v23 = vrot.slane %v52_v5, %v71_v15  ;;  %v4101_v24 = vrot.slane %v52_v5, %v75_v16  ;;  %v4103_v25 = vrot.slane %v52_v5, %v79_v17  ;;  %v4105_v26 = vrot.slane %v52_v5, %v83_v18 }
   0x8 LB: > { %v4134_v27 = vcombine.low %v4069_v3, %v4074_v4  ;;  %v3978_v28 = vmov 0.0   ;;  %vm3979_vm0 = vmmov 0   ;;  %v4142_v29 = vcombine.low %v4059_v1, %v4064_v2  ;;  %s2960_s30 = sshll.u32 %s3956_s3, 3  ;;  %v3721_v34 = vld [vmem:[%s4981_s4 + $0x10] sm:$0xff]   ;;  %v3723_v35 = vld [vmem:[%s4981_s4] sm:$0xff]   ;;  %v3722_v57 = vld [vmem:[%s4981_s4 + $0x18] sm:$0xff]   ;;  %s3956_s3 = sphi %s4115_s3, %s94_s3   ;;  %v3952_v7 = vphi %v85_v7, %v1488_v7   ;;  %v3948_v8 = vphi %v86_v8, %v1489_v8   ;;  %v3944_v9 = vphi %v87_v9, %v1490_v9   ;;  %v3940_v10 = vphi %v88_v10, %v1491_v10  }
   0x9   : > { %3312 = vmatprep.subr.bf16.mxu0 %v3978_v28  ;;  %3316 = vmatprep.mubr.msk.bf16.mxu0 %vm3979_vm0, %v3978_v28  ;;  %s100_s17 = scalar_lea.vmem %s4977_s0, %s2960_s30  ;;  %vm117_vm1 = vcmask 261120   ;;  %v103_v32 = vpack.c.bf16 %v3944_v9, %v3948_v8  ;;  %v104_v33 = vpack.c.bf16 %v3940_v10, %v3940_v10  ;;  %vm425_vm2 = vcmask 654336   ;;  %v3724_v58 = vld [vmem:[%s4981_s4 + $0x8] sm:$0xff]   ;;  %v3725_v59 = vld [vmem:[%s4981_s4 + $0x20] sm:$0xff]   ;;  %v3727_v61 = vld [vmem:[%s4981_s4 + $0x30] sm:$0xff]   ;;  %s3073_s19 = sshll.u32 %s3956_s3, 5 }
   0xa   : > { %3313 = vmatpush3.bf16.msra.mxu0 %v4134_v27  ;;  %v4149_v30 = vld [vmem:[%s100_s17] sm:$0xff]  ;;  %3342 = vmatprep.mubr.msk.bf16.mxu1 %vm425_vm2, %v3721_v34  ;;  %vm189_vm3 = vcmask 1043456   ;;  %v3726_v60 = vld [vmem:[%s4981_s4 + $0x28] sm:$0xff]   ;;  %v3728_v62 = vld [vmem:[%s4981_s4 + $0x38] sm:$0xff]   ;;  %s1493_s20 = scalar_lea.vmem [#allocation2], %s3073_s19  ;;  %s94_s3 = sadd.s32 1, %s3956_s3  }
   0xb   : > { %3314 = vmatprep.subr.bf16.mxu0 %v3978_v28  ;;  %v102_v31 = vpack.c.bf16 %v3952_v7, %v4149_v30  ;;  %v3729_v63 = vld [vmem:[%s4981_s4 + $0x40] sm:$0xff]   ;;  %v3730_v0 = vld [vmem:[%s4981_s4 + $0x48] sm:$0xff]   ;;  %v3731_v5 = vld [vmem:[%s4981_s4 + $0x50] sm:$0xff]   ;;  %p91_p0 = scmp.ge.s32.totalorder %s94_s3, 8  }
   0xc   : > { %v3732_v6 = vld [vmem:[%s4981_s4 + $0x58] sm:$0xff]   ;;  %v3733_v11 = vld [vmem:[%s4981_s4 + $0x60] sm:$0xff]   ;;  %v3734_v12 = vld [vmem:[%s4981_s4 + $0x68] sm:$0xff]   ;;  %s4577_s0 = smov (%p91_p0), 0  }
   0xd   : > { %v3735_v13 = vld [vmem:[%s4981_s4 + $0x70] sm:$0xff]   ;;  %v3736_v14 = vld [vmem:[%s4981_s4 + $0x78] sm:$0xff]   ;;  %v3737_v15 = vld [vmem:[%s4981_s4 + $0x80] sm:$0xff]  }
   0xe   : > { %3315 = vmatpush3.bf16.msra.mxu0 %v4142_v29  ;;  %v3738_v16 = vld [vmem:[%s4981_s4 + $0x88] sm:$0xff]   ;;  %v3739_v17 = vld [vmem:[%s4981_s4 + $0x90] sm:$0xff]   ;;  %v3740_v18 = vld [vmem:[%s4981_s4 + $0x98] sm:$0xff]  }
   0xf   : > { %v3744_v34 = vld [vmem:[%s4981_s4 + $0xb8] sm:$0xff]  }
  0x11   : > { %3317 = vmatmul.mubr.msk.bf16.vlgmr.msra.gmra.mxu0 %vm117_vm1, %v102_v31 }
  0x12   : > { %3320 = vmatprep.mubr.msk.bf16.mxu0 %vm3979_vm0, %v3978_v28 }
  0x19   : > { %3321 = vmatmul.mubr.msk.bf16.gmra.mxu0 %vm117_vm1, %v103_v32 }
  0x1a   : > { %3324 = vmatprep.mubr.msk.bf16.mxu0 %vm3979_vm0, %v3978_v28 }
  0x21   : > { %3325 = vmatmul.mubr.msk.bf16.gmra.mxu0 %vm117_vm1, %v104_v33 }
  0x22   : > { %3338 = vmatprep.mubr.msk.bf16.mxu0 %vm425_vm2, %v3723_v35  ;;  %v3745_v35 = vld [vmem:[%s4981_s4 + $0xc0] sm:$0xff]  }
  0xd1   : > { %v161_v36 = vpop.f32.mrf.mxu0 }
  0xd3   : > { %v3318_v37 = vpop.f32.mrf.mxu0 }
  0xd4   : > { %v3747_v37 = vld [vmem:[%s4981_s4 + $0xd0] sm:$0xff]  }
  0xd5   : > { %v164_v38 = vpop.f32.mrf.mxu0 }
  0xd6   : > { %v183_v46 = vpack.c.bf16 %v164_v38, %v161_v36  ;;  %v3746_v36 = vld [vmem:[%s4981_s4 + $0xc8] sm:$0xff]   ;;  %v3748_v38 = vld [vmem:[%s4981_s4 + $0xd8] sm:$0xff]  }
  0xd7   : > { %v3319_v39 = vpop.f32.mrf.mxu0 }
  0xd8   : > { %v190_v52 = vrot.slane %v183_v46, 4  ;;  %v3749_v39 = vld [vmem:[%s4981_s4 + $0xe0] sm:$0xff]  }
  0xd9   : > { %v169_v40 = vpop.f32.mrf.mxu0 }
  0xda   : > { %v199_v56 = vsel %vm189_vm3, %v104_v33, %v190_v52  ;;  %v3743_v33 = vld [vmem:[%s4981_s4 + $0xb0] sm:$0xff]  }
  0xdb   : > { %v3322_v41 = vpop.f32.mrf.mxu0 }
  0xdc   : > { %v3751_v41 = vld [vmem:[%s4981_s4 + $0xf0] sm:$0xff]  }
  0xdd   : > { %v172_v42 = vpop.f32.mrf.mxu0 }
  0xde   : > { %v184_v44 = vpack.c.bf16 %v172_v42, %v169_v40  ;;  %v3750_v40 = vld [vmem:[%s4981_s4 + $0xe8] sm:$0xff]   ;;  %v3752_v42 = vld [vmem:[%s4981_s4 + $0xf8] sm:$0xff]  }
  0xdf   : > { %v3323_v43 = vpop.f32.mrf.mxu0 }
  0xe0   : > { %v191_v49 = vrot.slane %v184_v44, 4 }
  0xe1   : > { %v177_v45 = vpop.f32.mrf.mxu0 }
  0xe2   : > { %v185_v47 = vpack.c.bf16 %v177_v45, %v177_v45  ;;  %v192_v55 = vsel %vm189_vm3, %v190_v52, %v191_v49 }
  0xe3   : > { %v3326_v48 = vpop.f32.mrf.mxu0 }
  0xe4   : > { %v193_v50 = vrot.slane %v185_v47, 4 }
  0xe5   : > { %v180_v51 = vpop.f32.mrf.mxu0 }
  0xe6   : > { %v194_v53 = vsel %vm189_vm3, %v191_v49, %v193_v50 }
  0xe7   : > { %v3327_v54 = vpop.f32.mrf.mxu0  ;;  %3328 = vmatprep.subr.bf16.mxu0 %v194_v53  ;;  %3612 = vmatprep.subr.bf16.mxu1 %v194_v53 }
  0xe8   : > { %3329 = vmatpush3.bf16.msra.mxu0 %v194_v53  ;;  %3617 = vmatpush3.bf16.msra.mxu1 %v194_v53  ;;  %v817_v53 = vld [vmem:[%s4983_s6 + $0x30] sm:$0xff] }
  0xe9   : > { %3330 = vmatprep.subr.bf16.mxu0 %v192_v55  ;;  %3613 = vmatprep.subr.bf16.mxu1 %v192_v55 }
  0xec   : > { %3331 = vmatpush3.bf16.msra.mxu0 %v192_v55  ;;  %3618 = vmatpush3.bf16.msra.mxu1 %v192_v55 }
  0xed   : > { %3332 = vmatprep.subr.bf16.mxu0 %v199_v56  ;;  %3614 = vmatprep.subr.bf16.mxu1 %v199_v56 }
  0xf0   : > { %3333 = vmatpush3.bf16.msra.mxu0 %v199_v56  ;;  %3619 = vmatpush3.bf16.msra.mxu1 %v199_v56 }
  0xf1   : > { %3615 = vmatprep.subr.bf16.mxu1 %v103_v32  ;;  %3334 = vmatprep.subr.bf16.mxu0 %v103_v32 }
  0xf4   : > { %3620 = vmatpush3.bf16.msra.mxu1 %v103_v32  ;;  %3335 = vmatpush3.bf16.msra.mxu0 %v103_v32  ;;  %v3742_v32 = vld [vmem:[%s4981_s4 + $0xa8] sm:$0xff]  }
  0xf5   : > { %3616 = vmatprep.subr.bf16.mxu1 %v102_v31  ;;  %3336 = vmatprep.subr.bf16.mxu0 %v102_v31 }
  0xf8   : > { %3621 = vmatpush3.bf16.msra.mxu1 %v102_v31  ;;  %3337 = vmatpush3.bf16.msra.mxu0 %v102_v31  ;;  %v3741_v31 = vld [vmem:[%s4981_s4 + $0xa0] sm:$0xff]  }
  0xf9   : > { %3402 = vmatprep.subr.bf16.mxu0 %v3978_v28 }
  0xfb   : > { %3343 = vmatmul.mubr.msk.bf16.vlgmr.msra.gmra.mxu1 %vm425_vm2, %v3722_v57  ;;  %3339 = vmatmul.mubr.msk.bf16.vlgmr.msra.gmra.mxu0 %vm425_vm2, %v3724_v58  ;;  %v815_v57 = vld [vmem:[%s4983_s6 + $0x20] sm:$0xff] }
  0xfc   : > { %3346 = vmatprep.mubr.msk.bf16.mxu1 %vm425_vm2, %v3725_v59  ;;  %3403 = vmatpush3.bf16.msra.mxu0 %v4134_v27 }
  0xfd   : > { %3404 = vmatprep.subr.bf16.mxu0 %v3978_v28  ;;  %3406 = vmatprep.mubr.msk.bf16.mxu0 %vm3979_vm0, %v3978_v28 }
 0x100   : > { %3405 = vmatpush3.bf16.msra.mxu0 %v4142_v29 }
 0x103   : > { %3347 = vmatmul.mubr.msk.bf16.gmra.mxu1 %vm425_vm2, %v3726_v60 }
 0x104   : > { %3350 = vmatprep.mubr.msk.bf16.mxu1 %vm425_vm2, %v3727_v61 }
 0x10b   : > { %3351 = vmatmul.mubr.msk.bf16.gmra.mxu1 %vm425_vm2, %v3728_v62  ;;  %v813_v62 = vld [vmem:[%s4983_s6 + $0x10] sm:$0xff] }
 0x10c   : > { %3354 = vmatprep.mubr.msk.bf16.mxu1 %vm425_vm2, %v3729_v63 }
 0x113   : > { %3355 = vmatmul.mubr.msk.bf16.gmra.mxu1 %vm425_vm2, %v3730_v0  ;;  %v818_v0 = vld [vmem:[%s4983_s6 + $0x38] sm:$0xff] }
 0x114   : > { %3358 = vmatprep.mubr.msk.bf16.mxu1 %vm425_vm2, %v3731_v5 }
 0x11b   : > { %3359 = vmatmul.mubr.msk.bf16.gmra.mxu1 %vm425_vm2, %v3732_v6 }
 0x11c   : > { %3362 = vmatprep.mubr.msk.bf16.mxu1 %vm425_vm2, %v3733_v11 }
 0x123   : > { %3363 = vmatmul.mubr.msk.bf16.gmra.mxu1 %vm425_vm2, %v3734_v12 }
 0x124   : > { %3366 = vmatprep.mubr.msk.bf16.mxu1 %vm425_vm2, %v3735_v13  ;;  %v811_v13 = vld [vmem:[%s4983_s6] sm:$0xff] }
 0x12b   : > { %3367 = vmatmul.mubr.msk.bf16.gmra.mxu1 %vm425_vm2, %v3736_v14 }
 0x12c   : > { %3370 = vmatprep.mubr.msk.bf16.mxu1 %vm425_vm2, %v3737_v15 }
 0x133   : > { %3371 = vmatmul.mubr.msk.bf16.gmra.mxu1 %vm425_vm2, %v3738_v16 }
 0x134   : > { %3374 = vmatprep.mubr.msk.bf16.mxu1 %vm425_vm2, %v3739_v17 }
 0x13b   : > { %3375 = vmatmul.mubr.msk.bf16.gmra.mxu1 %vm425_vm2, %v3740_v18  ;;  %v816_v18 = vld [vmem:[%s4983_s6 + $0x28] sm:$0xff] }
 0x13c   : > { %3378 = vmatprep.mubr.msk.bf16.mxu1 %vm425_vm2, %v3741_v31 }
 0x143   : > { %3379 = vmatmul.mubr.msk.bf16.gmra.mxu1 %vm425_vm2, %v3742_v32 }
 0x144   : > { %3382 = vmatprep.mubr.msk.bf16.mxu1 %vm425_vm2, %v3743_v33 }
 0x14b   : > { %3383 = vmatmul.mubr.msk.bf16.gmra.mxu1 %vm425_vm2, %v3744_v34 }
 0x14c   : > { %3386 = vmatprep.mubr.msk.bf16.mxu1 %vm425_vm2, %v3745_v35  ;;  %v814_v35 = vld [vmem:[%s4983_s6 + $0x18] sm:$0xff] }
 0x153   : > { %3387 = vmatmul.mubr.msk.bf16.gmra.mxu1 %vm425_vm2, %v3746_v36 }
 0x154   : > { %3390 = vmatprep.mubr.msk.bf16.mxu1 %vm425_vm2, %v3747_v37 }
 0x15b   : > { %3391 = vmatmul.mubr.msk.bf16.gmra.mxu1 %vm425_vm2, %v3748_v38 }
 0x15c   : > { %3394 = vmatprep.mubr.msk.bf16.mxu1 %vm425_vm2, %v3749_v39 }
 0x163   : > { %3395 = vmatmul.mubr.msk.bf16.gmra.mxu1 %vm425_vm2, %v3750_v40 }
 0x164   : > { %3398 = vmatprep.mubr.msk.bf16.mxu1 %vm425_vm2, %v3751_v41 }
 0x16b   : > { %3399 = vmatmul.mubr.msk.bf16.gmra.mxu1 %vm425_vm2, %v3752_v42 }
 0x1bb   : > { %v3344_v43 = vpop.f32.mrf.mxu1  ;;  %v3340_v47 = vpop.f32.mrf.mxu0 }
 0x1bc   : > { %v825_v52 = vmul.f32 %v3344_v43, %v4091_v19  ;;  %v821_v58 = vmul.f32 %v3340_v47, %v4091_v19  ;;  %v812_v43 = vld [vmem:[%s4983_s6 + $0x8] sm:$0xff] }
 0x1bd   : > { %v572_v44 = vpop.f32.mrf.mxu1  ;;  %v556_v50 = vpop.f32.mrf.mxu0 }
 0x1be   : > { %v823_v55 = vmul.f32 %v572_v44, %v4091_v19  ;;  %v833_v60 = vadd.f32 %v825_v52, %v817_v53  ;;  %v819_v5 = vmul.f32 %v556_v50, %v4091_v19  ;;  %v829_v17 = vadd.f32 %v821_v58, %v813_v62 }
 0x1bf   : > { %v3345_v45 = vpop.f32.mrf.mxu1  ;;  %v3341_v56 = vpop.f32.mrf.mxu0 }
 0x1c0   : > { %v826_v61 = vmul.f32 %v3345_v45, %v4091_v19  ;;  %v831_v11 = vadd.f32 %v823_v55, %v815_v57  ;;  %v822_v31 = vmul.f32 %v3341_v56, %v4091_v19  ;;  %v827_v38 = vadd.f32 %v819_v5, %v811_v13 }
 0x1c1   : > { %v575_v46 = vpop.f32.mrf.mxu1  ;;  %v559_v14 = vpop.f32.mrf.mxu0 }
 0x1c2   : > { %v824_v12 = vmul.f32 %v575_v46, %v4091_v19  ;;  %v834_v33 = vadd.f32 %v826_v61, %v818_v0  ;;  %v820_v39 = vmul.f32 %v559_v14, %v4091_v19  ;;  %v830_v46 = vadd.f32 %v822_v31, %v814_v35 }
 0x1c3   : > { %v3348_v48 = vpop.f32.mrf.mxu1 }
 0x1c4   : > { %v837_v34 = vmul.f32 %v3348_v48, %v4093_v20  ;;  %v832_v41 = vadd.f32 %v824_v12, %v816_v18  ;;  %v828_v55 = vadd.f32 %v820_v39, %v812_v43 }
 0x1c5   : > { %v588_v49 = vpop.f32.mrf.mxu1 }
 0x1c6   : > { %v835_v42 = vmul.f32 %v588_v49, %v4093_v20  ;;  %v845_v48 = vadd.f32 %v837_v34, %v829_v17 }
 0x1c7   : > { %v3349_v51 = vpop.f32.mrf.mxu1 }
 0x1c8   : > { %v838_v50 = vmul.f32 %v3349_v51, %v4093_v20  ;;  %v843_v57 = vadd.f32 %v835_v42, %v827_v38 }
 0x1c9   : > { %v591_v54 = vpop.f32.mrf.mxu1 }
 0x1ca   : > { %v836_v49 = vmul.f32 %v591_v54, %v4093_v20  ;;  %v846_v61 = vadd.f32 %v838_v50, %v830_v46 }
 0x1cb   : > { %v3352_v59 = vpop.f32.mrf.mxu1 }
 0x1cc   : > { %v841_v63 = vmul.f32 %v3352_v59, %v4093_v20  ;;  %v844_v5 = vadd.f32 %v836_v49, %v828_v55 }
 0x1cd   : > { %v604_v6 = vpop.f32.mrf.mxu1 }
 0x1ce   : > { %v849_v15 = vadd.f32 %v841_v63, %v833_v60  ;;  %v839_v16 = vmul.f32 %v604_v6, %v4093_v20 }
 0x1cf   : > { %v3353_v32 = vpop.f32.mrf.mxu1 }
 0x1d0   : > { %v847_v36 = vadd.f32 %v839_v16, %v831_v11  ;;  %v842_v37 = vmul.f32 %v3353_v32, %v4093_v20 }
 0x1d1   : > { %v607_v40 = vpop.f32.mrf.mxu1 }
 0x1d2   : > { %v850_v44 = vadd.f32 %v842_v37, %v834_v33  ;;  %v840_v45 = vmul.f32 %v607_v40, %v4093_v20 }
 0x1d3   : > { %v3356_v47 = vpop.f32.mrf.mxu1 }
 0x1d4   : > { %v848_v52 = vadd.f32 %v840_v45, %v832_v41  ;;  %v853_v53 = vmul.f32 %v3356_v47, %v4095_v21 }
 0x1d5   : > { %v620_v56 = vpop.f32.mrf.mxu1 }
 0x1d6   : > { %v861_v58 = vadd.f32 %v853_v53, %v845_v48  ;;  %v851_v59 = vmul.f32 %v620_v56, %v4095_v21 }
 0x1d7   : > { %v3357_v60 = vpop.f32.mrf.mxu1 }
 0x1d8   : > { %v4344_v62 = vadd.f32 %v851_v59, %v843_v57  ;;  %v854_v63 = vmul.f32 %v3357_v60, %v4095_v21 }
 0x1d9   : > { %v623_v0 = vpop.f32.mrf.mxu1 }
 0x1da   : > { %v862_v51 = vadd.f32 %v854_v63, %v846_v61  ;;  %v852_v6 = vmul.f32 %v623_v0, %v4095_v21 }
 0x1db   : > { %v3360_v11 = vpop.f32.mrf.mxu1 }
 0x1dc   : > { %v4348_v12 = vadd.f32 %v852_v6, %v844_v5  ;;  %v857_v13 = vmul.f32 %v3360_v11, %v4095_v21 }
 0x1dd   : > { %v636_v54 = vpop.f32.mrf.mxu1 }
 0x1de   : > { %v865_v14 = vadd.f32 %v857_v13, %v849_v15  ;;  %v855_v16 = vmul.f32 %v636_v54, %v4095_v21 }
 0x1df   : > { %v3361_v17 = vpop.f32.mrf.mxu1 }
 0x1e0   : > { %v863_v18 = vadd.f32 %v855_v16, %v847_v36  ;;  %v858_v31 = vmul.f32 %v3361_v17, %v4095_v21 }
 0x1e1   : > { %v639_v32 = vpop.f32.mrf.mxu1 }
 0x1e2   : > { %v866_v33 = vadd.f32 %v858_v31, %v850_v44  ;;  %v856_v34 = vmul.f32 %v639_v32, %v4095_v21 }
 0x1e3   : > { %v3364_v35 = vpop.f32.mrf.mxu1 }
 0x1e4   : > { %v864_v37 = vadd.f32 %v856_v34, %v848_v52  ;;  %v869_v38 = vmul.f32 %v3364_v35, %v4097_v22 }
 0x1e5   : > { %v652_v39 = vpop.f32.mrf.mxu1 }
 0x1e6   : > { %v4355_v40 = vadd.f32 %v869_v38, %v861_v58 }
 0x1e7   : > { %v3365_v41 = vpop.f32.mrf.mxu1 }
 0x1e8   : > { %v870_v15 = vmul.f32 %v3365_v41, %v4097_v22 }
 0x1e9   : > { %v655_v42 = vpop.f32.mrf.mxu1 }
 0x1ea   : > { %v4358_v43 = vadd.f32 %v870_v15, %v862_v51 }
 0x1eb   : > { %v3368_v36 = vpop.f32.mrf.mxu1 }
 0x1ec   : > { %v873_v45 = vmul.f32 %v3368_v36, %v4097_v22 }
 0x1ed   : > { %v668_v46 = vpop.f32.mrf.mxu1 }
 0x1ee   : > { %v881_v44 = vadd.f32 %v873_v45, %v865_v14  ;;  %v871_v47 = vmul.f32 %v668_v46, %v4097_v22 }
 0x1ef   : > { %v3369_v48 = vpop.f32.mrf.mxu1 }
 0x1f0   : > { %v879_v50 = vadd.f32 %v871_v47, %v863_v18  ;;  %v874_v52 = vmul.f32 %v3369_v48, %v4097_v22 }
 0x1f1   : > { %v671_v53 = vpop.f32.mrf.mxu1 }
 0x1f2   : > { %v882_v55 = vadd.f32 %v874_v52, %v866_v33  ;;  %v872_v56 = vmul.f32 %v671_v53, %v4097_v22 }
 0x1f3   : > { %v3372_v57 = vpop.f32.mrf.mxu1 }
 0x1f4   : > { %v880_v49 = vadd.f32 %v872_v56, %v864_v37  ;;  %v867_v56 = vmul.f32 %v652_v39, %v4097_v22 }
 0x1f5   : > { %v684_v58 = vpop.f32.mrf.mxu1 }
 0x1f7   : > { %v3373_v59 = vpop.f32.mrf.mxu1 }
 0x1f9   : > { %v687_v60 = vpop.f32.mrf.mxu1 }
 0x1fb   : > { %v3376_v61 = vpop.f32.mrf.mxu1 }
 0x1fc   : > { %v889_v63 = vmul.f32 %v3376_v61, %v4099_v23  ;;  %v885_v61 = vmul.f32 %v3372_v57, %v4099_v23 }
 0x1fd   : > { %v700_v0 = vpop.f32.mrf.mxu1 }
 0x1fe   : > { %v897_v5 = vadd.f32 %v889_v63, %v881_v44  ;;  %v887_v51 = vmul.f32 %v700_v0, %v4099_v23  ;;  %v883_v0 = vmul.f32 %v684_v58, %v4099_v23  ;;  %v893_v57 = vadd.f32 %v885_v61, %v4355_v40 }
 0x1ff   : > { %v3377_v6 = vpop.f32.mrf.mxu1 }
 0x200   : > { %v895_v11 = vadd.f32 %v887_v51, %v879_v50  ;;  %v890_v13 = vmul.f32 %v3377_v6, %v4099_v23 }
 0x201   : > { %v703_v54 = vpop.f32.mrf.mxu1 }
 0x202   : > { %v898_v14 = vadd.f32 %v890_v13, %v882_v55  ;;  %v888_v16 = vmul.f32 %v703_v54, %v4099_v23  ;;  %v875_v13 = vadd.f32 %v867_v56, %v4344_v62  ;;  %v868_v54 = vmul.f32 %v655_v42, %v4097_v22 }
 0x203   : > { %v3380_v17 = vpop.f32.mrf.mxu1 }
 0x204   : > { %v896_v18 = vadd.f32 %v888_v16, %v880_v49  ;;  %v901_v51 = vmul.f32 %v3380_v17, %v4101_v24  ;;  %v891_v17 = vadd.f32 %v883_v0, %v875_v13  ;;  %v876_v40 = vadd.f32 %v868_v54, %v4348_v12 }
 0x205   : > { %v716_v31 = vpop.f32.mrf.mxu1 }
 0x206   : > { %v899_v39 = vmul.f32 %v716_v31, %v4101_v24  ;;  %v909_v62 = vadd.f32 %v901_v51, %v893_v57 }
 0x207   : > { %v3381_v32 = vpop.f32.mrf.mxu1 }
 0x209   : > { %v719_v33 = vpop.f32.mrf.mxu1 }
 0x20b   : > { %v3384_v34 = vpop.f32.mrf.mxu1 }
 0x20c   : > { %v905_v35 = vmul.f32 %v3384_v34, %v4101_v24  ;;  %v886_v34 = vmul.f32 %v3373_v59, %v4099_v23 }
 0x20d   : > { %v732_v37 = vpop.f32.mrf.mxu1 }
 0x20e   : > { %v913_v38 = vadd.f32 %v905_v35, %v897_v5  ;;  %v903_v41 = vmul.f32 %v732_v37, %v4101_v24  ;;  %v884_v35 = vmul.f32 %v687_v60, %v4099_v23 }
 0x20f   : > { %v3385_v15 = vpop.f32.mrf.mxu1 }
 0x210   : > { %v911_v36 = vadd.f32 %v903_v41, %v895_v11  ;;  %v906_v45 = vmul.f32 %v3385_v15, %v4101_v24  ;;  %v907_v41 = vadd.f32 %v899_v39, %v891_v17  ;;  %v902_v15 = vmul.f32 %v3381_v32, %v4101_v24 }
 0x211   : > { %v735_v46 = vpop.f32.mrf.mxu1 }
 0x212   : > { %v914_v44 = vadd.f32 %v906_v45, %v898_v14  ;;  %v904_v47 = vmul.f32 %v735_v46, %v4101_v24  ;;  %v900_v45 = vmul.f32 %v719_v33, %v4101_v24 }
 0x213   : > { %v3388_v48 = vpop.f32.mrf.mxu1 }
 0x214   : > { %v912_v50 = vadd.f32 %v904_v47, %v896_v18  ;;  %v917_v16 = vmul.f32 %v3388_v48, %v4103_v25  ;;  %v894_v47 = vadd.f32 %v886_v34, %v4358_v43  ;;  %v892_v48 = vadd.f32 %v884_v35, %v876_v40 }
 0x215   : > { %v748_v52 = vpop.f32.mrf.mxu1 }
 0x216   : > { %v915_v42 = vmul.f32 %v748_v52, %v4103_v25  ;;  %v925_v46 = vadd.f32 %v917_v16, %v909_v62  ;;  %v910_v61 = vadd.f32 %v902_v15, %v894_v47  ;;  %v908_v33 = vadd.f32 %v900_v45, %v892_v48  ;;  %v3753_v48 = vld [vmem:[%s4982_s5] sm:$0xff]  }
 0x217   : > { %v3389_v53 = vpop.f32.mrf.mxu1 }
 0x218   : > { %v923_v56 = vadd.f32 %v915_v42, %v907_v41 }
 0x219   : > { %v751_v55 = vpop.f32.mrf.mxu1 }
 0x21a   : > { %v916_v12 = vmul.f32 %v751_v55, %v4103_v25 }
 0x21b   : > { %v3392_v49 = vpop.f32.mrf.mxu1 }
 0x21c   : > { %v921_v63 = vmul.f32 %v3392_v49, %v4103_v25  ;;  %v924_v43 = vadd.f32 %v916_v12, %v908_v33 }
 0x21d   : > { %v764_v5 = vpop.f32.mrf.mxu1 }
 0x21e   : > { %v4377_v6 = vadd.f32 %v921_v63, %v913_v38  ;;  %v919_v11 = vmul.f32 %v764_v5, %v4103_v25 }
 0x21f   : > { %v3393_v14 = vpop.f32.mrf.mxu1 }
 0x220   : > { %v4385_v18 = vadd.f32 %v919_v11, %v911_v36  ;;  %v922_v58 = vmul.f32 %v3393_v14, %v4103_v25 }
 0x221   : > { %v767_v37 = vpop.f32.mrf.mxu1 }
 0x222   : > { %v4391_v38 = vadd.f32 %v922_v58, %v914_v44  ;;  %v920_v31 = vmul.f32 %v767_v37, %v4103_v25  ;;  %v918_v44 = vmul.f32 %v3389_v53, %v4103_v25 }
 0x223   : > { %v3396_v36 = vpop.f32.mrf.mxu1 }
 0x224   : > { %v4397_v59 = vadd.f32 %v920_v31, %v912_v50  ;;  %v933_v60 = vmul.f32 %v3396_v36, %v4105_v26  ;;  %v926_v51 = vadd.f32 %v918_v44, %v910_v61 }
 0x225   : > { %v780_v52 = vpop.f32.mrf.mxu1 }
 0x226   : > { %v941_v49 = vadd.f32 %v933_v60, %v925_v46  ;;  %v931_v32 = vmul.f32 %v780_v52, %v4105_v26 }
 0x227   : > { %v3397_v63 = vpop.f32.mrf.mxu1 }
 0x228   : > { %v3032_v0 = vmul.f32 -1.442695, %v941_v49  ;;  %v939_v50 = vadd.f32 %v931_v32, %v923_v56  ;;  %v934_v5 = vmul.f32 %v3397_v63, %v4105_v26 }
 0x229   : > { %v783_v11 = vpop.f32.mrf.mxu1 }
 0x22a   : > { %3769 = vpow2.f32 %v3032_v0  ;;  %v3030_v13 = vmul.f32 -1.442695, %v939_v50  ;;  %v932_v53 = vmul.f32 %v783_v11, %v4105_v26  ;;  %v942_v54 = vadd.f32 %v934_v5, %v926_v51 }
 0x22c   : > { %3771 = vpow2.f32 %v3030_v13  ;;  %v940_v55 = vadd.f32 %v932_v53, %v924_v43  ;;  %v3033_v14 = vmul.f32 -1.442695, %v942_v54 }
 0x22e   : > { %v3031_v39 = vmul.f32 -1.442695, %v940_v55 }
 0x230   : > { %3773 = vpow2.f32 %v3031_v39 }
 0x231   : > { %3775 = vpow2.f32 %v3033_v14  ;;  %v3754_v14 = vld [vmem:[%s4982_s5 + $0x8] sm:$0xff]  }
 0x237   : > { %v3770_v57 = vpop.eup %3769 }
 0x238   : > { %v973_v58 = vadd.f32 1.0, %v3770_v57  ;;  %v3755_v57 = vld [vmem:[%s4982_s5 + $0x10] sm:$0xff]  }
 0x239   : > { %v3772_v16 = vpop.eup %3771 }
 0x23a   : > { %v971_v17 = vadd.f32 1.0, %v3772_v16  ;;  %v3756_v16 = vld [vmem:[%s4982_s5 + $0x18] sm:$0xff]  }
 0x23c   : > { %3777 = vrcp.f32 %v971_v17  ;;  %v3758_v17 = vld [vmem:[%s4982_s5 + $0x28] sm:$0xff]  }
 0x23d   : > { %v3774_v34 = vpop.eup %3773  ;;  %3779 = vrcp.f32 %v973_v58  ;;  %v3757_v58 = vld [vmem:[%s4982_s5 + $0x20] sm:$0xff]  }
 0x23e   : > { %v972_v35 = vadd.f32 1.0, %v3774_v34  ;;  %v3776_v37 = vpop.eup %3775  ;;  %v3759_v34 = vld [vmem:[%s4982_s5 + $0x30] sm:$0xff]  }
 0x23f   : > { %v974_v62 = vadd.f32 1.0, %v3776_v37  ;;  %v3761_v37 = vld [vmem:[%s4982_s5 + $0x40] sm:$0xff]  }
 0x240   : > { %3781 = vrcp.f32 %v972_v35  ;;  %v3760_v35 = vld [vmem:[%s4982_s5 + $0x38] sm:$0xff]  }
 0x241   : > { %3783 = vrcp.f32 %v974_v62  ;;  %v3762_v62 = vld [vmem:[%s4982_s5 + $0x48] sm:$0xff]  }
 0x249   : > { %v3778_v42 = vpop.eup %3777 }
 0x24a   : > { %v995_v31 = vmul.f32 %v3952_v7, %v3778_v42  ;;  %v3780_v40 = vpop.eup %3779  ;;  %v3763_v42 = vld [vmem:[%s4982_s5 + $0x50] sm:$0xff]  }
 0x24b   : > { %v997_v45 = vmul.f32 %v3944_v9, %v3780_v40  ;;  %v3765_v40 = vld [vmem:[%s4982_s5 + $0x60] sm:$0xff]  }
 0x24c   : > { %v999_v41 = vpack.c.bf16 %v995_v31, %v4149_v30  ;;  %v3764_v31 = vld [vmem:[%s4982_s5 + $0x58] sm:$0xff]  }
 0x24d   : > { %v3782_v15 = vpop.eup %3781 }
 0x24e   : > { %3407 = vmatmul.mubr.msk.bf16.vlgmr.msra.gmra.mxu0 %vm117_vm1, %v999_v41  ;;  %v996_v36 = vmul.f32 %v3948_v8, %v3782_v15  ;;  %v3784_v60 = vpop.eup %3783  ;;  %v3767_v15 = vld [vmem:[%s4982_s5 + $0x70] sm:$0xff]  }
 0x24f   : > { %3410 = vmatprep.mubr.msk.bf16.mxu0 %vm3979_vm0, %v3978_v28  ;;  %v998_v47 = vmul.f32 %v3940_v10, %v3784_v60 }
 0x250   : > { %v1000_v46 = vpack.c.bf16 %v997_v45, %v996_v36  ;;  %v3768_v36 = vld [vmem:[%s4982_s5 + $0x78] sm:$0xff]  }
 0x251   : > { %v1001_v30 = vpack.c.bf16 %v998_v47, %v998_v47 }
 0x256   : > { %3411 = vmatmul.mubr.msk.bf16.gmra.mxu0 %vm117_vm1, %v1000_v46 }
 0x257   : > { %3414 = vmatprep.mubr.msk.bf16.mxu0 %vm3979_vm0, %v3978_v28 }
 0x25e   : > { %3415 = vmatmul.mubr.msk.bf16.gmra.mxu0 %vm117_vm1, %v1001_v30 }
 0x25f   : > { %3428 = vmatprep.mubr.msk.bf16.mxu0 %vm425_vm2, %v3753_v48 }
 0x30e   : > { %v1045_v44 = vpop.f32.mrf.mxu0 }
 0x310   : > { %v3408_v52 = vpop.f32.mrf.mxu0 }
 0x311   : > { %v3400_v52 = vpop.f32.mrf.mxu1 }
 0x312   : > { %v1048_v56 = vpop.f32.mrf.mxu0 }
 0x313   : > { %v1067_v0 = vpack.c.bf16 %v1048_v56, %v1045_v44 }
 0x314   : > { %v3409_v12 = vpop.f32.mrf.mxu0 }
 0x315   : > { %v1073_v13 = vrot.slane %v1067_v0, 4 }
 0x316   : > { %v1053_v49 = vpop.f32.mrf.mxu0 }
 0x317   : > { %v1081_v39 = vsel %vm189_vm3, %v1001_v30, %v1073_v13 }
 0x318   : > { %v3412_v32 = vpop.f32.mrf.mxu0 }
 0x319   : > { %v937_v32 = vmul.f32 %v3400_v52, %v4105_v26 }
 0x31a   : > { %v1056_v61 = vpop.f32.mrf.mxu0 }
 0x31b   : > { %v1068_v28 = vpack.c.bf16 %v1056_v61, %v1053_v49  ;;  %v796_v49 = vpop.f32.mrf.mxu1 }
 0x31c   : > { %v3413_v63 = vpop.f32.mrf.mxu0 }
 0x31d   : > { %v1074_v51 = vrot.slane %v1068_v28, 4  ;;  %v935_v63 = vmul.f32 %v796_v49, %v4105_v26  ;;  %v1407_v49 = vld [vmem:[%s4984_s7 + $0x18] sm:$0xff] }
 0x31e   : > { %v1061_v33 = vpop.f32.mrf.mxu0 }
 0x31f   : > { %v1069_v50 = vpack.c.bf16 %v1061_v33, %v1061_v33  ;;  %v1075_v55 = vsel %vm189_vm3, %v1073_v13, %v1074_v51  ;;  %v945_v33 = vadd.f32 %v937_v32, %v4377_v6 }
 0x320   : > { %v3416_v5 = vpop.f32.mrf.mxu0 }
 0x321   : > { %v1076_v11 = vrot.slane %v1069_v50, 4  ;;  %v3401_v50 = vpop.f32.mrf.mxu1  ;;  %v943_v5 = vadd.f32 %v935_v63, %v4385_v18 }
 0x322   : > { %v1064_v43 = vpop.f32.mrf.mxu0 }
 0x323   : > { %v1077_v53 = vsel %vm189_vm3, %v1074_v51, %v1076_v11  ;;  %v3036_v11 = vmul.f32 -1.442695, %v945_v33  ;;  %v799_v13 = vpop.f32.mrf.mxu1 }
 0x324   : > { %v3417_v54 = vpop.f32.mrf.mxu0  ;;  %3418 = vmatprep.subr.bf16.mxu0 %v1077_v53 }
 0x325   : > { %3419 = vmatpush3.bf16.msra.mxu0 %v1077_v53  ;;  %v3034_v53 = vmul.f32 -1.442695, %v943_v5  ;;  %v938_v54 = vmul.f32 %v3401_v50, %v4105_v26  ;;  %3785 = vpow2.f32 %v3036_v11 }
 0x326   : > { %3420 = vmatprep.subr.bf16.mxu0 %v1075_v55 }
 0x327   : > { %3787 = vpow2.f32 %v3034_v53 }
 0x329   : > { %3421 = vmatpush3.bf16.msra.mxu0 %v1075_v55 }
 0x32a   : > { %3422 = vmatprep.subr.bf16.mxu0 %v1081_v39 }
 0x32d   : > { %3423 = vmatpush3.bf16.msra.mxu0 %v1081_v39  ;;  %v936_v39 = vmul.f32 %v799_v13, %v4105_v26 }
 0x32e   : > { %3424 = vmatprep.subr.bf16.mxu0 %v1000_v46 }
 0x331   : > { %3425 = vmatpush3.bf16.msra.mxu0 %v1000_v46 }
 0x332   : > { %3426 = vmatprep.subr.bf16.mxu0 %v999_v41 }
 0x335   : > { %3427 = vmatpush3.bf16.msra.mxu0 %v999_v41  ;;  %v3766_v41 = vld [vmem:[%s4982_s5 + $0x68] sm:$0xff]  }
 0x338   : > { %3429 = vmatmul.mubr.msk.bf16.vlgmr.msra.gmra.mxu0 %vm425_vm2, %v3754_v14 }
 0x339   : > { %3432 = vmatprep.mubr.msk.bf16.mxu0 %vm425_vm2, %v3755_v57  ;;  %v946_v57 = vadd.f32 %v938_v54, %v4391_v38 }
 0x33b   : > { %v3037_v18 = vmul.f32 -1.442695, %v946_v57 }
 0x33d   : > { %3789 = vpow2.f32 %v3037_v18 }
 0x340   : > { %3433 = vmatmul.mubr.msk.bf16.gmra.mxu0 %vm425_vm2, %v3756_v16  ;;  %v944_v16 = vadd.f32 %v936_v39, %v4397_v59 }
 0x341   : > { %3436 = vmatprep.mubr.msk.bf16.mxu0 %vm425_vm2, %v3757_v58 }
 0x348   : > { %3437 = vmatmul.mubr.msk.bf16.gmra.mxu0 %vm425_vm2, %v3758_v17 }
 0x349   : > { %3440 = vmatprep.mubr.msk.bf16.mxu0 %vm425_vm2, %v3759_v34  ;;  %v3035_v34 = vmul.f32 -1.442695, %v944_v16 }
 0x34b   : > { %3791 = vpow2.f32 %v3035_v34 }
 0x350   : > { %3441 = vmatmul.mubr.msk.bf16.gmra.mxu0 %vm425_vm2, %v3760_v35 }
 0x351   : > { %3444 = vmatprep.mubr.msk.bf16.mxu0 %vm425_vm2, %v3761_v37 }
 0x358   : > { %3445 = vmatmul.mubr.msk.bf16.gmra.mxu0 %vm425_vm2, %v3762_v62 }
 0x359   : > { %3448 = vmatprep.mubr.msk.bf16.mxu0 %vm425_vm2, %v3763_v42  ;;  %v1406_v42 = vld [vmem:[%s4984_s7 + $0x10] sm:$0xff] }
 0x360   : > { %3449 = vmatmul.mubr.msk.bf16.gmra.mxu0 %vm425_vm2, %v3764_v31 }
 0x361   : > { %3452 = vmatprep.mubr.msk.bf16.mxu0 %vm425_vm2, %v3765_v40  ;;  %v3786_v40 = vpop.eup %3785 }
 0x362   : > { %v3788_v52 = vpop.eup %3787 }
 0x363   : > { %v975_v54 = vadd.f32 1.0, %v3788_v52  ;;  %v3790_v52 = vpop.eup %3789 }
 0x368   : > { %3453 = vmatmul.mubr.msk.bf16.gmra.mxu0 %vm425_vm2, %v3766_v41  ;;  %v1404_v41 = vld [vmem:[%s4984_s7] sm:$0xff] }
 0x369   : > { %3456 = vmatprep.mubr.msk.bf16.mxu0 %vm425_vm2, %v3767_v15 }
 0x370   : > { %3457 = vmatmul.mubr.msk.bf16.gmra.mxu0 %vm425_vm2, %v3768_v36 }
 0x3f8   : > { %v3430_v45 = vpop.f32.mrf.mxu0 }
 0x3f9   : > { %v1410_v62 = vmul.f32 %v3430_v45, %v4091_v19 }
 0x3fa   : > { %v1277_v46 = vpop.f32.mrf.mxu0 }
 0x3fb   : > { %v1408_v38 = vmul.f32 %v1277_v46, %v4091_v19  ;;  %v1414_v45 = vadd.f32 %v1410_v62, %v1406_v42  ;;  %v977_v46 = vadd.f32 1.0, %v3786_v40 }
 0x3fc   : > { %v3431_v60 = vpop.f32.mrf.mxu0 }
 0x3fd   : > { %v1411_v15 = vmul.f32 %v3431_v60, %v4091_v19  ;;  %v1412_v5 = vadd.f32 %v1408_v38, %v1404_v41  ;;  %v1405_v60 = vld [vmem:[%s4984_s7 + $0x8] sm:$0xff]  ;;  %3793 = vrcp.f32 %v977_v46 }
 0x3fe   : > { %v1280_v47 = vpop.f32.mrf.mxu0  ;;  %3795 = vrcp.f32 %v975_v54 }
 0x400   : > { %v3434_v30 = vpop.f32.mrf.mxu0 }
 0x401   : > { %v1418_v59 = vmul.f32 %v3434_v30, %v4093_v20  ;;  %v1409_v30 = vmul.f32 %v1280_v47, %v4091_v19 }
 0x402   : > { %v1293_v48 = vpop.f32.mrf.mxu0 }
 0x403   : > { %v1416_v32 = vmul.f32 %v1293_v48, %v4093_v20  ;;  %v1422_v11 = vadd.f32 %v1418_v59, %v1414_v45  ;;  %v1415_v48 = vadd.f32 %v1411_v15, %v1407_v49  ;;  %v1413_v34 = vadd.f32 %v1409_v30, %v1405_v60 }
 0x404   : > { %v3435_v44 = vpop.f32.mrf.mxu0  ;;  %v978_v60 = vadd.f32 1.0, %v3790_v52 }
 0x405   : > { %v1419_v33 = vmul.f32 %v3435_v44, %v4093_v20  ;;  %v1420_v57 = vadd.f32 %v1416_v32, %v1412_v5 }
 0x406   : > { %v1296_v56 = vpop.f32.mrf.mxu0  ;;  %3797 = vrcp.f32 %v978_v60 }
 0x407   : > { %v1423_v62 = vadd.f32 %v1419_v33, %v1415_v48  ;;  %v3792_v33 = vpop.eup %3791 }
 0x408   : > { %v3438_v12 = vpop.f32.mrf.mxu0 }
 0x409   : > { %v1426_v63 = vmul.f32 %v3438_v12, %v4095_v21  ;;  %v1417_v12 = vmul.f32 %v1296_v56, %v4093_v20 }
 0x40a   : > { %v1309_v61 = vpop.f32.mrf.mxu0 }
 0x40b   : > { %v1424_v13 = vmul.f32 %v1309_v61, %v4095_v21  ;;  %v1430_v44 = vadd.f32 %v1426_v63, %v1422_v11  ;;  %v1421_v59 = vadd.f32 %v1417_v12, %v1413_v34 }
 0x40c   : > { %v3439_v28 = vpop.f32.mrf.mxu0 }
 0x40d   : > { %v1427_v39 = vmul.f32 %v3439_v28, %v4095_v21  ;;  %v1428_v40 = vadd.f32 %v1424_v13, %v1420_v57 }
 0x40e   : > { %v1312_v0 = vpop.f32.mrf.mxu0 }
 0x40f   : > { %v1425_v42 = vmul.f32 %v1312_v0, %v4095_v21  ;;  %v1431_v41 = vadd.f32 %v1427_v39, %v1423_v62 }
 0x410   : > { %v3442_v51 = vpop.f32.mrf.mxu0 }
 0x411   : > { %v1434_v53 = vmul.f32 %v3442_v51, %v4097_v22  ;;  %v1429_v32 = vadd.f32 %v1425_v42, %v1421_v59  ;;  %v3794_v59 = vpop.eup %3793 }
 0x412   : > { %v1325_v43 = vpop.f32.mrf.mxu0 }
 0x413   : > { %v1432_v16 = vmul.f32 %v1325_v43, %v4097_v22  ;;  %v1438_v38 = vadd.f32 %v1434_v53, %v1430_v44 }
 0x414   : > { %v3443_v55 = vpop.f32.mrf.mxu0 }
 0x415   : > { %v1435_v61 = vmul.f32 %v3443_v55, %v4097_v22  ;;  %v1436_v45 = vadd.f32 %v1432_v16, %v1428_v40 }
 0x416   : > { %v1328_v14 = vpop.f32.mrf.mxu0 }
 0x417   : > { %v1433_v15 = vmul.f32 %v1328_v14, %v4097_v22  ;;  %v1439_v63 = vadd.f32 %v1435_v61, %v1431_v41  ;;  %v3796_v41 = vpop.eup %3795 }
 0x418   : > { %v3446_v6 = vpop.f32.mrf.mxu0 }
 0x419   : > { %v1442_v18 = vmul.f32 %v3446_v6, %v4099_v23  ;;  %v1437_v11 = vadd.f32 %v1433_v15, %v1429_v32  ;;  %v3798_v15 = vpop.eup %3797  ;;  %v1476_v32 = vmul.f32 %v3952_v7, %v3796_v41 }
 0x41a   : > { %v1341_v58 = vpop.f32.mrf.mxu0 }
 0x41b   : > { %v1440_v56 = vmul.f32 %v1341_v58, %v4099_v23  ;;  %v1446_v49 = vadd.f32 %v1442_v18, %v1438_v38 }
 0x41c   : > { %v3447_v17 = vpop.f32.mrf.mxu0 }
 0x41d   : > { %v1443_v43 = vmul.f32 %v3447_v17, %v4099_v23  ;;  %v1444_v14 = vadd.f32 %v1440_v56, %v1436_v45  ;;  %v1478_v45 = vmul.f32 %v3944_v9, %v3794_v59 }
 0x41e   : > { %v1344_v35 = vpop.f32.mrf.mxu0 }
 0x41f   : > { %v1441_v58 = vmul.f32 %v1344_v35, %v4099_v23  ;;  %v1447_v13 = vadd.f32 %v1443_v43, %v1439_v63  ;;  %v1482_v43 = vsub.f32 1.0, %v3794_v59 }
 0x420   : > { %v3450_v37 = vpop.f32.mrf.mxu0 }
 0x421   : > { %v1450_v28 = vmul.f32 %v3450_v37, %v4101_v24 }
 0x422   : > { %v1357_v31 = vpop.f32.mrf.mxu0 }
 0x423   : > { %v1448_v0 = vmul.f32 %v1357_v31, %v4101_v24  ;;  %v1454_v5 = vadd.f32 %v1450_v28, %v1446_v49 }
 0x424   : > { %v3451_v36 = vpop.f32.mrf.mxu0 }
 0x425   : > { %v1451_v37 = vmul.f32 %v3451_v36, %v4101_v24  ;;  %v1452_v48 = vadd.f32 %v1448_v0, %v1444_v14  ;;  %v976_v36 = vadd.f32 1.0, %v3792_v33  ;;  %v1480_v0 = vsub.f32 1.0, %v3796_v41 }
 0x426   : > { %v1360_v50 = vpop.f32.mrf.mxu0 }
 0x427   : > { %v1449_v31 = vmul.f32 %v1360_v50, %v4101_v24  ;;  %v1455_v46 = vadd.f32 %v1451_v37, %v1447_v13  ;;  %v3075_v13 = vld [vmem:[%s4978_s1 + $0x28] sm:$0xff] (%p91_p0)  }
 0x428   : > { %v3454_v47 = vpop.f32.mrf.mxu0 }
 0x429   : > { %v1458_v55 = vmul.f32 %v3454_v47, %v4103_v25  ;;  %v1445_v47 = vadd.f32 %v1441_v58, %v1437_v11  ;;  %v1483_v58 = vsub.f32 1.0, %v3798_v15  ;;  %v3074_v11 = vld [vmem:[%s4978_s1 + $0x20] sm:$0xff] (%p91_p0)  }
 0x42a   : > { %v1373_v51 = vpop.f32.mrf.mxu0 }
 0x42b   : > { %v1456_v17 = vmul.f32 %v1373_v51, %v4103_v25  ;;  %v1462_v12 = vadd.f32 %v1458_v55, %v1454_v5  ;;  %v1453_v50 = vadd.f32 %v1449_v31, %v1445_v47  ;;  %v3076_v31 = vld [vmem:[%s4978_s1 + $0x30] sm:$0xff] (%p91_p0)  }
 0x42c   : > { %v3455_v6 = vpop.f32.mrf.mxu0 }
 0x42d   : > { %v1459_v39 = vmul.f32 %v3455_v6, %v4103_v25  ;;  %v1460_v44 = vadd.f32 %v1456_v17, %v1452_v48 }
 0x42e   : > { %v1376_v30 = vpop.f32.mrf.mxu0 }
 0x42f   : > { %v1457_v16 = vmul.f32 %v1376_v30, %v4103_v25  ;;  %v1463_v42 = vadd.f32 %v1459_v39, %v1455_v46  ;;  %v1479_v30 = vmul.f32 %v3940_v10, %v3798_v15 }
 0x430   : > { %v3458_v53 = vpop.f32.mrf.mxu0 }
 0x431   : > { %v1466_v35 = vmul.f32 %v3458_v53, %v4105_v26  ;;  %v1461_v40 = vadd.f32 %v1457_v16, %v1453_v50  ;;  %v3077_v53 = vld [vmem:[%s4978_s1 + $0x38] sm:$0xff] (%p91_p0)  }
 0x432   : > { %v1389_v57 = vpop.f32.mrf.mxu0 }
 0x433   : > { %v1470_v18 = vadd.f32 %v1466_v35, %v1462_v12  ;;  %v1464_v34 = vmul.f32 %v1389_v57, %v4105_v26 }
 0x434   : > { %v3459_v62 = vpop.f32.mrf.mxu0 }
 0x435   : > { %3799 = vtanh.f32 %v1470_v18  ;;  %v1468_v61 = vadd.f32 %v1464_v34, %v1460_v44  ;;  %v1467_v51 = vmul.f32 %v3459_v62, %v4105_v26 }
 0x436   : > { %3801 = vrcp.f32 %v976_v36  ;;  %v1392_v54 = vpop.f32.mrf.mxu0 }
 0x437   : > { %3803 = vtanh.f32 %v1468_v61  ;;  %v1471_v38 = vadd.f32 %v1467_v51, %v1463_v42  ;;  %v1465_v56 = vmul.f32 %v1392_v54, %v4105_v26 }
 0x439   : > { %3805 = vtanh.f32 %v1471_v38  ;;  %v1469_v28 = vadd.f32 %v1465_v56, %v1461_v40 }
 0x43b   : > { %3807 = vtanh.f32 %v1469_v28 }
 0x442   : > { %v3800_v6 = vpop.eup %3799 }
 0x443   : > { %v3802_v52 = vpop.eup %3801  ;;  %v1486_v49 = vmul.f32 %v3800_v6, %v1482_v43 }
 0x444   : > { %v3804_v55 = vpop.eup %3803  ;;  %v1481_v14 = vsub.f32 1.0, %v3802_v52  ;;  %v1477_v17 = vmul.f32 %v3948_v8, %v3802_v52 }
 0x445   : > { %v1490_v9 = vadd.f32 %v1486_v49, %v1478_v45   ;;  %v1484_v63 = vmul.f32 %v3804_v55, %v1480_v0 }
 0x446   : > { %v3806_v37 = vpop.eup %3805 }
 0x447   : > { %1496 = vst.msk [vmem:[%s1493_s20 + $0x10] sm:$0xff] %vm117_vm1, %v1490_v9  ;;  %v1488_v7 = vadd.f32 %v1484_v63, %v1476_v32   ;;  %v1487_v33 = vmul.f32 %v3806_v37, %v1483_v58 }
 0x448   : > { %v3808_v5 = vpop.eup %3807 }
 0x449   : > { %1494 = vst.msk [vmem:[%s1493_s20] sm:$0xff] %vm117_vm1, %v1488_v7  ;;  %v1491_v10 = vadd.f32 %v1487_v33, %v1479_v30   ;;  %v1485_v60 = vmul.f32 %v3808_v5, %v1481_v14  ;;  %93 = sbr.rel (!%p91_p0) target bundleno = 8 (0x8), region = 94 }
 0x44b   : > { %1497 = vst.msk [vmem:[%s1493_s20 + $0x18] sm:$0xff] %vm117_vm1, %v1491_v10  ;;  %v1489_v8 = vadd.f32 %v1485_v60, %v1477_v17  }
 0x44d   : > { %1495 = vst.msk [vmem:[%s1493_s20 + $0x8] sm:$0xff] %vm117_vm1, %v1489_v8 }
 0x44e LB: > { %3460 = vmatprep.subr.bf16.mxu0 %v4134_v27  ;;  %s3078_s1 = sshll.u32 %s3976_s0, 5  ;;  %v1521_v8 = vpack.c.bf16 %v3968_v13, %v3972_v11  ;;  %v1522_v10 = vpack.c.bf16 %v3960_v53, %v3964_v31  ;;  %v3809_v48 = vld [vmem:[%s4985_s8 + $0x10] sm:$0xff]   ;;  %v3811_v12 = vld [vmem:[%s4985_s8] sm:$0xff]   ;;  %v3810_v42 = vld [vmem:[%s4985_s8 + $0x18] sm:$0xff]   ;;  %s1508_s0 = sadd.s32 1, %s3976_s0   ;;  %s3976_s0 = sphi %s4577_s0, %s1508_s0   ;;  %v3972_v11 = vphi %v3074_v11, %v2800_v11   ;;  %v3968_v13 = vphi %v3075_v13, %v2801_v13   ;;  %v3964_v31 = vphi %v3076_v31, %v2802_v31   ;;  %v3960_v53 = vphi %v3077_v53, %v2803_v53  }
 0x44f   : > { %3461 = vmatpush3.bf16.msra.mxu0 %v4134_v27  ;;  %s4598_s4 = scalar_lea.vmem [#allocation2], %s3078_s1  ;;  %3492 = vmatprep.mubr.bf16.mxu1 %v3809_v48  ;;  %v3812_v61 = vld [vmem:[%s4985_s8 + $0x8] sm:$0xff]   ;;  %v3813_v51 = vld [vmem:[%s4985_s8 + $0x20] sm:$0xff]   ;;  %v3815_v40 = vld [vmem:[%s4985_s8 + $0x30] sm:$0xff]   ;;  %p1505_p1 = scmp.ge.s32.totalorder %s1508_s0, 8  }
 0x450   : > { %3462 = vmatprep.subr.bf16.mxu0 %v4142_v29  ;;  %v3814_v54 = vld [vmem:[%s4985_s8 + $0x28] sm:$0xff]   ;;  %v3816_v38 = vld [vmem:[%s4985_s8 + $0x38] sm:$0xff]   ;;  %v3817_v56 = vld [vmem:[%s4985_s8 + $0x40] sm:$0xff]   ;;  %vm2914_vm4 = vcmask (%p1505_p1), 257024  }
 0x451   : > { %v3818_v28 = vld [vmem:[%s4985_s8 + $0x48] sm:$0xff]   ;;  %v3819_v59 = vld [vmem:[%s4985_s8 + $0x50] sm:$0xff]   ;;  %v3820_v41 = vld [vmem:[%s4985_s8 + $0x58] sm:$0xff]  }
 0x452   : > { %v3821_v15 = vld [vmem:[%s4985_s8 + $0x60] sm:$0xff]   ;;  %v3822_v43 = vld [vmem:[%s4985_s8 + $0x68] sm:$0xff]   ;;  %v3823_v6 = vld [vmem:[%s4985_s8 + $0x70] sm:$0xff]  }
 0x453   : > { %3463 = vmatpush3.bf16.msra.mxu0 %v4142_v29  ;;  %v3824_v52 = vld [vmem:[%s4985_s8 + $0x78] sm:$0xff]   ;;  %v3825_v45 = vld [vmem:[%s4985_s8 + $0x80] sm:$0xff]   ;;  %v3826_v49 = vld [vmem:[%s4985_s8 + $0x88] sm:$0xff]  }
 0x454   : > { %v1515_v1 = vld [vmem:[%s4598_s4] sm:$0xff]  ;;  %v1516_v2 = vld [vmem:[%s4598_s4 + $0x8] sm:$0xff]  ;;  %v1517_v3 = vld [vmem:[%s4598_s4 + $0x10] sm:$0xff] }
 0x455   : > { %v4604_v4 = vpack.c.bf16 %v1516_v2, %v1515_v1  ;;  %v1518_v7 = vld [vmem:[%s4598_s4 + $0x18] sm:$0xff]  ;;  %v3827_v0 = vld [vmem:[%s4985_s8 + $0x90] sm:$0xff]   ;;  %v3829_v32 = vld [vmem:[%s4985_s8 + $0xa0] sm:$0xff]  }
 0x456   : > { %v4609_v9 = vpack.c.bf16 %v1518_v7, %v1517_v3  ;;  %v3828_v55 = vld [vmem:[%s4985_s8 + $0x98] sm:$0xff]   ;;  %v3830_v63 = vld [vmem:[%s4985_s8 + $0xa8] sm:$0xff]   ;;  %v3831_v58 = vld [vmem:[%s4985_s8 + $0xb0] sm:$0xff]  }
 0x457   : > { %3464 = vmatprep.mubr.msk.bf16.mxu0 %vm117_vm1, %v4604_v4  ;;  %v3832_v37 = vld [vmem:[%s4985_s8 + $0xb8] sm:$0xff]   ;;  %v3833_v30 = vld [vmem:[%s4985_s8 + $0xc0] sm:$0xff]   ;;  %v3834_v33 = vld [vmem:[%s4985_s8 + $0xc8] sm:$0xff]  }
 0x458   : > { %3465 = vmatmul.mubr.msk.bf16.vlgmr.msra.gmra.mxu0 %vm117_vm1, %v4609_v9  ;;  %v3835_v14 = vld [vmem:[%s4985_s8 + $0xd0] sm:$0xff]   ;;  %v3836_v5 = vld [vmem:[%s4985_s8 + $0xd8] sm:$0xff]   ;;  %v3837_v17 = vld [vmem:[%s4985_s8 + $0xe0] sm:$0xff]  }
 0x459   : > { %3468 = vmatprep.mubr.msk.bf16.mxu0 %vm117_vm1, %v1521_v8  ;;  %v3838_v60 = vld [vmem:[%s4985_s8 + $0xe8] sm:$0xff]   ;;  %v3839_v1 = vld [vmem:[%s4985_s8 + $0xf0] sm:$0xff]   ;;  %v3840_v2 = vld [vmem:[%s4985_s8 + $0xf8] sm:$0xff]  }
 0x460   : > { %3469 = vmatmul.mubr.msk.bf16.gmra.mxu0 %vm117_vm1, %v1522_v10 }
 0x461   : > { %3488 = vmatprep.mubr.bf16.mxu0 %v3811_v12 }
 0x518   : > { %v3466_v39 = vpop.f32.mrf.mxu0 }
 0x51a   : > { %v1582_v35 = vpop.f32.mrf.mxu0 }
 0x51c   : > { %v3467_v36 = vpop.f32.mrf.mxu0 }
 0x51d   : > { %v1614_v50 = vpack.c.bf16 %v3467_v36, %v3466_v39 }
 0x51e   : > { %v1585_v47 = vpop.f32.mrf.mxu0 }
 0x51f   : > { %v1613_v62 = vpack.c.bf16 %v1585_v47, %v1582_v35 }
 0x520   : > { %v3470_v46 = vpop.f32.mrf.mxu0 }
 0x522   : > { %v1598_v57 = vpop.f32.mrf.mxu0 }
 0x524   : > { %v3471_v44 = vpop.f32.mrf.mxu0 }
 0x525   : > { %v1616_v16 = vpack.c.bf16 %v3471_v44, %v3470_v46  ;;  %v2168_v46 = vld [vmem:[%s4987_s10 + $0x30] sm:$0xff] }
 0x526   : > { %v1601_v18 = vpop.f32.mrf.mxu0 }
 0x527   : > { %v1615_v34 = vpack.c.bf16 %v1601_v18, %v1598_v57  ;;  %3472 = vmatprep.subr.bf16.mxu0 %v1616_v16  ;;  %3622 = vmatprep.subr.bf16.mxu1 %v1616_v16  ;;  %v2166_v18 = vld [vmem:[%s4987_s10 + $0x20] sm:$0xff] }
 0x528   : > { %3473 = vmatpush3.bf16.msra.mxu0 %v1616_v16  ;;  %3630 = vmatpush3.bf16.msra.mxu1 %v1616_v16 }
 0x529   : > { %3474 = vmatprep.subr.bf16.mxu0 %v1615_v34  ;;  %3623 = vmatprep.subr.bf16.mxu1 %v1615_v34 }
 0x52c   : > { %3475 = vmatpush3.bf16.msra.mxu0 %v1615_v34  ;;  %3631 = vmatpush3.bf16.msra.mxu1 %v1615_v34 }
 0x52d   : > { %3476 = vmatprep.subr.bf16.mxu0 %v1614_v50  ;;  %3624 = vmatprep.subr.bf16.mxu1 %v1614_v50 }
 0x530   : > { %3477 = vmatpush3.bf16.msra.mxu0 %v1614_v50  ;;  %3632 = vmatpush3.bf16.msra.mxu1 %v1614_v50 }
 0x531   : > { %3478 = vmatprep.subr.bf16.mxu0 %v1613_v62  ;;  %3625 = vmatprep.subr.bf16.mxu1 %v1613_v62 }
 0x534   : > { %3479 = vmatpush3.bf16.msra.mxu0 %v1613_v62  ;;  %3633 = vmatpush3.bf16.msra.mxu1 %v1613_v62 }
 0x535   : > { %3626 = vmatprep.subr.bf16.mxu1 %v1522_v10  ;;  %3480 = vmatprep.subr.bf16.mxu0 %v1522_v10 }
 0x538   : > { %3634 = vmatpush3.bf16.msra.mxu1 %v1522_v10  ;;  %3481 = vmatpush3.bf16.msra.mxu0 %v1522_v10 }
 0x539   : > { %3627 = vmatprep.subr.bf16.mxu1 %v1521_v8  ;;  %3482 = vmatprep.subr.bf16.mxu0 %v1521_v8 }
 0x53c   : > { %3635 = vmatpush3.bf16.msra.mxu1 %v1521_v8  ;;  %3483 = vmatpush3.bf16.msra.mxu0 %v1521_v8 }
 0x53d   : > { %3628 = vmatprep.subr.bf16.mxu1 %v4609_v9  ;;  %3484 = vmatprep.subr.bf16.mxu0 %v4609_v9 }
 0x540   : > { %3636 = vmatpush3.bf16.msra.mxu1 %v4609_v9  ;;  %3485 = vmatpush3.bf16.msra.mxu0 %v4609_v9 }
 0x541   : > { %3629 = vmatprep.subr.bf16.mxu1 %v4604_v4  ;;  %3486 = vmatprep.subr.bf16.mxu0 %v4604_v4 }
 0x544   : > { %3637 = vmatpush3.bf16.msra.mxu1 %v4604_v4  ;;  %3487 = vmatpush3.bf16.msra.mxu0 %v4604_v4 }
 0x545   : > { %3552 = vmatprep.subr.bf16.mxu0 %v4134_v27 }
 0x547   : > { %3493 = vmatmul.mubr.bf16.vlgmr.msra.gmra.mxu1 %v3810_v42  ;;  %3489 = vmatmul.mubr.bf16.vlgmr.msra.gmra.mxu0 %v3812_v61  ;;  %v2164_v61 = vld [vmem:[%s4987_s10 + $0x10] sm:$0xff] }
 0x548   : > { %3496 = vmatprep.mubr.bf16.mxu1 %v3813_v51  ;;  %3553 = vmatpush3.bf16.msra.mxu0 %v4134_v27 }
 0x549   : > { %3554 = vmatprep.subr.bf16.mxu0 %v4142_v29  ;;  %3556 = vmatprep.mubr.msk.bf16.mxu0 %vm117_vm1, %v4604_v4 }
 0x54c   : > { %3555 = vmatpush3.bf16.msra.mxu0 %v4142_v29 }
 0x54f   : > { %3497 = vmatmul.mubr.bf16.gmra.mxu1 %v3814_v54  ;;  %3557 = vmatmul.mubr.msk.bf16.vlgmr.msra.gmra.mxu0 %vm117_vm1, %v4609_v9  ;;  %v2169_v54 = vld [vmem:[%s4987_s10 + $0x38] sm:$0xff] }
 0x550   : > { %3500 = vmatprep.mubr.bf16.mxu1 %v3815_v40 }
 0x557   : > { %3501 = vmatmul.mubr.bf16.gmra.mxu1 %v3816_v38 }
 0x558   : > { %3504 = vmatprep.mubr.bf16.mxu1 %v3817_v56 }
 0x55f   : > { %3505 = vmatmul.mubr.bf16.gmra.mxu1 %v3818_v28 }
 0x560   : > { %3508 = vmatprep.mubr.bf16.mxu1 %v3819_v59  ;;  %v2162_v59 = vld [vmem:[%s4987_s10] sm:$0xff] }
 0x567   : > { %3509 = vmatmul.mubr.bf16.gmra.mxu1 %v3820_v41 }
 0x568   : > { %3512 = vmatprep.mubr.bf16.mxu1 %v3821_v15 }
 0x56f   : > { %3513 = vmatmul.mubr.bf16.gmra.mxu1 %v3822_v43 }
 0x570   : > { %3516 = vmatprep.mubr.bf16.mxu1 %v3823_v6 }
 0x577   : > { %3517 = vmatmul.mubr.bf16.gmra.mxu1 %v3824_v52  ;;  %v2167_v52 = vld [vmem:[%s4987_s10 + $0x28] sm:$0xff] }
 0x578   : > { %3520 = vmatprep.mubr.bf16.mxu1 %v3825_v45 }
 0x57f   : > { %3521 = vmatmul.mubr.bf16.gmra.mxu1 %v3826_v49 }
 0x580   : > { %3524 = vmatprep.mubr.bf16.mxu1 %v3827_v0 }
 0x587   : > { %3525 = vmatmul.mubr.bf16.gmra.mxu1 %v3828_v55 }
 0x588   : > { %3528 = vmatprep.mubr.bf16.mxu1 %v3829_v32  ;;  %v2165_v32 = vld [vmem:[%s4987_s10 + $0x18] sm:$0xff] }
 0x58f   : > { %3529 = vmatmul.mubr.bf16.gmra.mxu1 %v3830_v63 }
 0x590   : > { %3532 = vmatprep.mubr.bf16.mxu1 %v3831_v58 }
 0x597   : > { %3533 = vmatmul.mubr.bf16.gmra.mxu1 %v3832_v37 }
 0x598   : > { %3536 = vmatprep.mubr.bf16.mxu1 %v3833_v30 }
 0x59f   : > { %3537 = vmatmul.mubr.bf16.gmra.mxu1 %v3834_v33 }
 0x5a0   : > { %3540 = vmatprep.mubr.bf16.mxu1 %v3835_v14 }
 0x5a7   : > { %3541 = vmatmul.mubr.bf16.gmra.mxu1 %v3836_v5 }
 0x5a8   : > { %3544 = vmatprep.mubr.bf16.mxu1 %v3837_v17  ;;  %v2163_v17 = vld [vmem:[%s4987_s10 + $0x8] sm:$0xff] }
 0x5af   : > { %3545 = vmatmul.mubr.bf16.gmra.mxu1 %v3838_v60 }
 0x5b0   : > { %3548 = vmatprep.mubr.bf16.mxu1 %v3839_v1 }
 0x5b7   : > { %3549 = vmatmul.mubr.bf16.gmra.mxu1 %v3840_v2 }
 0x607   : > { %v3494_v3 = vpop.f32.mrf.mxu1  ;;  %v3490_v48 = vpop.f32.mrf.mxu0 }
 0x608   : > { %v2176_v47 = vmul.f32 %v3494_v3, %v4091_v19  ;;  %v2172_v34 = vmul.f32 %v3490_v48, %v4091_v19 }
 0x609   : > { %v1923_v7 = vpop.f32.mrf.mxu1  ;;  %v1907_v35 = vpop.f32.mrf.mxu0 }
 0x60a   : > { %v2174_v44 = vmul.f32 %v1923_v7, %v4091_v19  ;;  %v2184_v62 = vadd.f32 %v2176_v47, %v2168_v46  ;;  %v2170_v40 = vmul.f32 %v1907_v35, %v4091_v19  ;;  %v2180_v6 = vadd.f32 %v2172_v34, %v2164_v61 }
 0x60b   : > { %v3495_v8 = vpop.f32.mrf.mxu1  ;;  %v3491_v16 = vpop.f32.mrf.mxu0 }
 0x60c   : > { %v2177_v42 = vmul.f32 %v3495_v8, %v4091_v19  ;;  %v2182_v56 = vadd.f32 %v2174_v44, %v2166_v18  ;;  %v2173_v45 = vmul.f32 %v3491_v16, %v4091_v19  ;;  %v2178_v37 = vadd.f32 %v2170_v40, %v2162_v59 }
 0x60d   : > { %v1926_v10 = vpop.f32.mrf.mxu1  ;;  %v1910_v41 = vpop.f32.mrf.mxu0 }
 0x60e   : > { %v2175_v28 = vmul.f32 %v1926_v10, %v4091_v19  ;;  %v2185_v0 = vadd.f32 %v2177_v42, %v2169_v54  ;;  %v2171_v30 = vmul.f32 %v1910_v41, %v4091_v19  ;;  %v2181_v2 = vadd.f32 %v2173_v45, %v2165_v32 }
 0x60f   : > { %v3498_v12 = vpop.f32.mrf.mxu1 }
 0x610   : > { %v2188_v55 = vmul.f32 %v3498_v12, %v4093_v20  ;;  %v2183_v14 = vadd.f32 %v2175_v28, %v2167_v52  ;;  %v2179_v12 = vadd.f32 %v2171_v30, %v2163_v17 }
 0x611   : > { %v1939_v39 = vpop.f32.mrf.mxu1 }
 0x612   : > { %v2186_v5 = vmul.f32 %v1939_v39, %v4093_v20  ;;  %v2196_v7 = vadd.f32 %v2188_v55, %v2180_v6 }
 0x613   : > { %v3499_v36 = vpop.f32.mrf.mxu1 }
 0x614   : > { %v2189_v8 = vmul.f32 %v3499_v36, %v4093_v20  ;;  %v2194_v47 = vadd.f32 %v2186_v5, %v2178_v37 }
 0x615   : > { %v1942_v57 = vpop.f32.mrf.mxu1 }
 0x616   : > { %v2187_v39 = vmul.f32 %v1942_v57, %v4093_v20  ;;  %v2197_v18 = vadd.f32 %v2189_v8, %v2181_v2 }
 0x617   : > { %v3502_v50 = vpop.f32.mrf.mxu1 }
 0x618   : > { %v2192_v51 = vmul.f32 %v3502_v50, %v4093_v20  ;;  %v2195_v36 = vadd.f32 %v2187_v39, %v2179_v12 }
 0x619   : > { %v1955_v38 = vpop.f32.mrf.mxu1 }
 0x61a   : > { %v2200_v15 = vadd.f32 %v2192_v51, %v2184_v62  ;;  %v2190_v43 = vmul.f32 %v1955_v38, %v4093_v20 }
 0x61b   : > { %v3503_v49 = vpop.f32.mrf.mxu1 }
 0x61c   : > { %v2198_v63 = vadd.f32 %v2190_v43, %v2182_v56  ;;  %v2193_v58 = vmul.f32 %v3503_v49, %v4093_v20 }
 0x61d   : > { %v1958_v33 = vpop.f32.mrf.mxu1 }
 0x61e   : > { %v2201_v60 = vadd.f32 %v2193_v58, %v2185_v0  ;;  %v2191_v1 = vmul.f32 %v1958_v33, %v4093_v20 }
 0x61f   : > { %v3506_v3 = vpop.f32.mrf.mxu1 }
 0x620   : > { %v2199_v10 = vadd.f32 %v2191_v1, %v2183_v14  ;;  %v2204_v48 = vmul.f32 %v3506_v3, %v4095_v21 }
 0x621   : > { %v1971_v35 = vpop.f32.mrf.mxu1 }
 0x622   : > { %v4772_v46 = vadd.f32 %v2204_v48, %v2196_v7  ;;  %v2202_v44 = vmul.f32 %v1971_v35, %v4095_v21 }
 0x623   : > { %v3507_v16 = vpop.f32.mrf.mxu1 }
 0x624   : > { %v4775_v34 = vadd.f32 %v2202_v44, %v2194_v47  ;;  %v2205_v50 = vmul.f32 %v3507_v16, %v4095_v21 }
 0x625   : > { %v1974_v62 = vpop.f32.mrf.mxu1 }
 0x626   : > { %v4778_v42 = vadd.f32 %v2205_v50, %v2197_v18  ;;  %v2203_v61 = vmul.f32 %v1974_v62, %v4095_v21 }
 0x627   : > { %v3510_v51 = vpop.f32.mrf.mxu1 }
 0x628   : > { %v4781_v54 = vadd.f32 %v2203_v61, %v2195_v36  ;;  %v2208_v57 = vmul.f32 %v3510_v51, %v4095_v21 }
 0x629   : > { %v1987_v40 = vpop.f32.mrf.mxu1 }
 0x62a   : > { %v2216_v38 = vadd.f32 %v2208_v57, %v2200_v15  ;;  %v2206_v56 = vmul.f32 %v1987_v40, %v4095_v21 }
 0x62b   : > { %v3511_v28 = vpop.f32.mrf.mxu1 }
 0x62c   : > { %v2214_v59 = vadd.f32 %v2206_v56, %v2198_v63  ;;  %v2209_v41 = vmul.f32 %v3511_v28, %v4095_v21 }
 0x62d   : > { %v1990_v43 = vpop.f32.mrf.mxu1 }
 0x62e   : > { %v2217_v6 = vadd.f32 %v2209_v41, %v2201_v60  ;;  %v2207_v52 = vmul.f32 %v1990_v43, %v4095_v21 }
 0x62f   : > { %v3514_v45 = vpop.f32.mrf.mxu1 }
 0x630   : > { %v2215_v49 = vadd.f32 %v2207_v52, %v2199_v10 }
 0x631   : > { %v2003_v0 = vpop.f32.mrf.mxu1 }
 0x633   : > { %v3515_v55 = vpop.f32.mrf.mxu1 }
 0x635   : > { %v2006_v32 = vpop.f32.mrf.mxu1 }
 0x637   : > { %v3518_v58 = vpop.f32.mrf.mxu1 }
 0x638   : > { %v2224_v37 = vmul.f32 %v3518_v58, %v4097_v22 }
 0x639   : > { %v2019_v30 = vpop.f32.mrf.mxu1 }
 0x63a   : > { %v2232_v15 = vadd.f32 %v2224_v37, %v2216_v38  ;;  %v2222_v33 = vmul.f32 %v2019_v30, %v4097_v22 }
 0x63b   : > { %v3519_v14 = vpop.f32.mrf.mxu1 }
 0x63c   : > { %v2230_v63 = vadd.f32 %v2222_v33, %v2214_v59  ;;  %v2225_v5 = vmul.f32 %v3519_v14, %v4097_v22 }
 0x63d   : > { %v2022_v17 = vpop.f32.mrf.mxu1 }
 0x63e   : > { %v2233_v60 = vadd.f32 %v2225_v5, %v2217_v6  ;;  %v2223_v1 = vmul.f32 %v2022_v17, %v4097_v22  ;;  %v2220_v5 = vmul.f32 %v3514_v45, %v4097_v22 }
 0x63f   : > { %v3522_v2 = vpop.f32.mrf.mxu1 }
 0x640   : > { %v2231_v3 = vadd.f32 %v2223_v1, %v2215_v49  ;;  %v2236_v1 = vmul.f32 %v3522_v2, %v4099_v23  ;;  %v2219_v2 = vmul.f32 %v2006_v32, %v4097_v22 }
 0x641   : > { %v2035_v7 = vpop.f32.mrf.mxu1 }
 0x643   : > { %v3523_v8 = vpop.f32.mrf.mxu1 }
 0x645   : > { %v2038_v10 = vpop.f32.mrf.mxu1 }
 0x647   : > { %v3526_v48 = vpop.f32.mrf.mxu1 }
 0x648   : > { %v2240_v12 = vmul.f32 %v3526_v48, %v4099_v23 }
 0x649   : > { %v2051_v35 = vpop.f32.mrf.mxu1 }
 0x64a   : > { %v2248_v47 = vadd.f32 %v2240_v12, %v2232_v15  ;;  %v2238_v39 = vmul.f32 %v2051_v35, %v4099_v23  ;;  %v2228_v12 = vadd.f32 %v2220_v5, %v4772_v46  ;;  %v2221_v35 = vmul.f32 %v3515_v55, %v4097_v22 }
 0x64b   : > { %v3527_v44 = vpop.f32.mrf.mxu1 }
 0x64c   : > { %v2246_v16 = vadd.f32 %v2238_v39, %v2230_v63  ;;  %v2241_v18 = vmul.f32 %v3527_v44, %v4099_v23 }
 0x64d   : > { %v2054_v50 = vpop.f32.mrf.mxu1 }
 0x64e   : > { %v2249_v62 = vadd.f32 %v2241_v18, %v2233_v60  ;;  %v2239_v36 = vmul.f32 %v2054_v50, %v4099_v23  ;;  %v2218_v60 = vmul.f32 %v2003_v0, %v4097_v22  ;;  %v2244_v18 = vadd.f32 %v2236_v1, %v2228_v12 }
 0x64f   : > { %v3530_v61 = vpop.f32.mrf.mxu1  ;;  %v2237_v50 = vmul.f32 %v3523_v8, %v4099_v23 }
 0x650   : > { %v2247_v51 = vadd.f32 %v2239_v36, %v2231_v3  ;;  %v2252_v39 = vmul.f32 %v3530_v61, %v4101_v24 }
 0x651   : > { %v2067_v57 = vpop.f32.mrf.mxu1 }
 0x652   : > { %v2250_v46 = vmul.f32 %v2067_v57, %v4101_v24 }
 0x653   : > { %v3531_v40 = vpop.f32.mrf.mxu1 }
 0x654   : > { %v2253_v32 = vmul.f32 %v3531_v40, %v4101_v24 }
 0x655   : > { %v2070_v38 = vpop.f32.mrf.mxu1 }
 0x657   : > { %v3534_v56 = vpop.f32.mrf.mxu1 }
 0x658   : > { %v2256_v28 = vmul.f32 %v3534_v56, %v4101_v24  ;;  %v2260_v56 = vadd.f32 %v2252_v39, %v2244_v18 }
 0x659   : > { %v2083_v59 = vpop.f32.mrf.mxu1 }
 0x65a   : > { %v2264_v41 = vadd.f32 %v2256_v28, %v2248_v47  ;;  %v2254_v43 = vmul.f32 %v2083_v59, %v4101_v24  ;;  %v2234_v47 = vmul.f32 %v2035_v7, %v4099_v23 }
 0x65b   : > { %v3535_v6 = vpop.f32.mrf.mxu1 }
 0x65c   : > { %v2262_v52 = vadd.f32 %v2254_v43, %v2246_v16  ;;  %v2257_v49 = vmul.f32 %v3535_v6, %v4101_v24  ;;  %v2226_v16 = vadd.f32 %v2218_v60, %v4775_v34  ;;  %v2229_v34 = vadd.f32 %v2221_v35, %v4778_v42 }
 0x65d   : > { %v2086_v58 = vpop.f32.mrf.mxu1 }
 0x65e   : > { %v2265_v37 = vadd.f32 %v2257_v49, %v2249_v62  ;;  %v2255_v30 = vmul.f32 %v2086_v58, %v4101_v24  ;;  %v2242_v61 = vadd.f32 %v2234_v47, %v2226_v16  ;;  %v2245_v43 = vadd.f32 %v2237_v50, %v2229_v34 }
 0x65f   : > { %v3538_v15 = vpop.f32.mrf.mxu1 }
 0x660   : > { %v2263_v33 = vadd.f32 %v2255_v30, %v2247_v51  ;;  %v2268_v55 = vmul.f32 %v3538_v15, %v4103_v25  ;;  %v2235_v51 = vmul.f32 %v2038_v10, %v4099_v23  ;;  %v2258_v6 = vadd.f32 %v2250_v46, %v2242_v61 }
 0x661   : > { %v2099_v14 = vpop.f32.mrf.mxu1 }
 0x662   : > { %v2266_v8 = vmul.f32 %v2099_v14, %v4103_v25  ;;  %v2276_v49 = vadd.f32 %v2268_v55, %v2260_v56  ;;  %v2261_v14 = vadd.f32 %v2253_v32, %v2245_v43 }
 0x663   : > { %v3539_v63 = vpop.f32.mrf.mxu1 }
 0x664   : > { %v2269_v10 = vmul.f32 %v3539_v63, %v4103_v25  ;;  %v2274_v5 = vadd.f32 %v2266_v8, %v2258_v6 }
 0x665   : > { %v2102_v17 = vpop.f32.mrf.mxu1 }
 0x667   : > { %v3542_v3 = vpop.f32.mrf.mxu1 }
 0x668   : > { %v2272_v48 = vmul.f32 %v3542_v3, %v4103_v25 }
 0x669   : > { %v2115_v44 = vpop.f32.mrf.mxu1 }
 0x66a   : > { %v4808_v45 = vadd.f32 %v2272_v48, %v2264_v41  ;;  %v2270_v0 = vmul.f32 %v2115_v44, %v4103_v25  ;;  %v2227_v41 = vadd.f32 %v2219_v2, %v4781_v54 }
 0x66b   : > { %v3543_v62 = vpop.f32.mrf.mxu1 }
 0x66c   : > { %v4815_v7 = vadd.f32 %v2270_v0, %v2262_v52  ;;  %v2273_v36 = vmul.f32 %v3543_v62, %v4103_v25  ;;  %v2251_v52 = vmul.f32 %v2070_v38, %v4101_v24  ;;  %v2243_v30 = vadd.f32 %v2235_v51, %v2227_v41 }
 0x66d   : > { %v2118_v28 = vpop.f32.mrf.mxu1  ;;  %v2277_v38 = vadd.f32 %v2269_v10, %v2261_v14 }
 0x66e   : > { %v4822_v59 = vadd.f32 %v2273_v36, %v2265_v37  ;;  %v2271_v57 = vmul.f32 %v2118_v28, %v4103_v25  ;;  %v2267_v37 = vmul.f32 %v2102_v17, %v4103_v25  ;;  %v2259_v1 = vadd.f32 %v2251_v52, %v2243_v30  ;;  %v3841_v52 = vld [vmem:[%s4986_s9] sm:$0xff]  }
 0x66f   : > { %v3546_v42 = vpop.f32.mrf.mxu1 }
 0x670   : > { %v4828_v58 = vadd.f32 %v2271_v57, %v2263_v33  ;;  %v2284_v40 = vmul.f32 %v3546_v42, %v4105_v26  ;;  %v2275_v33 = vadd.f32 %v2267_v37, %v2259_v1  ;;  %v3558_v42 = vpop.f32.mrf.mxu0 }
 0x671   : > { %v2131_v15 = vpop.f32.mrf.mxu1 }
 0x672   : > { %v2292_v60 = vadd.f32 %v2284_v40, %v2276_v49  ;;  %v2282_v54 = vmul.f32 %v2131_v15, %v4105_v26  ;;  %v2392_v49 = vpop.f32.mrf.mxu0 }
 0x673   : > { %v3547_v3 = vpop.f32.mrf.mxu1 }
 0x674   : > { %v3119_v48 = vmul.f32 -1.442695, %v2292_v60  ;;  %v2290_v12 = vadd.f32 %v2282_v54, %v2274_v5  ;;  %v2285_v63 = vmul.f32 %v3547_v3, %v4105_v26  ;;  %v3559_v10 = vpop.f32.mrf.mxu0  ;;  %v3842_v3 = vld [vmem:[%s4986_s9 + $0x8] sm:$0xff]  }
 0x675   : > { %v2134_v35 = vpop.f32.mrf.mxu1  ;;  %v2424_v54 = vpack.c.bf16 %v3559_v10, %v3558_v42 }
 0x676   : > { %3857 = vpow2.f32 %v3119_v48  ;;  %v3117_v47 = vmul.f32 -1.442695, %v2290_v12  ;;  %v2293_v39 = vadd.f32 %v2285_v63, %v2277_v38  ;;  %v2283_v17 = vmul.f32 %v2134_v35, %v4105_v26  ;;  %v2395_v40 = vpop.f32.mrf.mxu0  ;;  %v3843_v38 = vld [vmem:[%s4986_s9 + $0x10] sm:$0xff]   ;;  %v3844_v48 = vld [vmem:[%s4986_s9 + $0x18] sm:$0xff]   ;;  %v3850_v35 = vld [vmem:[%s4986_s9 + $0x48] sm:$0xff]  }
 0x677   : > { %v2423_v1 = vpack.c.bf16 %v2395_v40, %v2392_v49  ;;  %v3847_v12 = vld [vmem:[%s4986_s9 + $0x30] sm:$0xff]   ;;  %v3848_v63 = vld [vmem:[%s4986_s9 + $0x38] sm:$0xff]  }
 0x678   : > { %3859 = vpow2.f32 %v3117_v47  ;;  %v3120_v44 = vmul.f32 -1.442695, %v2293_v39  ;;  %v2291_v16 = vadd.f32 %v2283_v17, %v2275_v33  ;;  %v3849_v33 = vld [vmem:[%s4986_s9 + $0x40] sm:$0xff]   ;;  %v3851_v47 = vld [vmem:[%s4986_s9 + $0x50] sm:$0xff]   ;;  %v3852_v39 = vld [vmem:[%s4986_s9 + $0x58] sm:$0xff]  }
 0x679   : > { %v3853_v17 = vld [vmem:[%s4986_s9 + $0x60] sm:$0xff]  }
 0x67a   : > { %3861 = vpow2.f32 %v3120_v44  ;;  %v3118_v0 = vmul.f32 -1.442695, %v2291_v16  ;;  %v3854_v44 = vld [vmem:[%s4986_s9 + $0x68] sm:$0xff]   ;;  %v3855_v16 = vld [vmem:[%s4986_s9 + $0x70] sm:$0xff]  }
 0x67c   : > { %3863 = vpow2.f32 %v3118_v0  ;;  %v3856_v0 = vld [vmem:[%s4986_s9 + $0x78] sm:$0xff]  }
 0x683   : > { %v3858_v2 = vpop.eup %3857 }
 0x684   : > { %v2324_v18 = vadd.f32 1.0, %v3858_v2 }
 0x685   : > { %v3860_v50 = vpop.eup %3859 }
 0x686   : > { %v2322_v46 = vadd.f32 1.0, %v3860_v50  ;;  %3865 = vrcp.f32 %v2324_v18 }
 0x687   : > { %v3862_v62 = vpop.eup %3861 }
 0x688   : > { %v2325_v55 = vadd.f32 1.0, %v3862_v62  ;;  %3867 = vrcp.f32 %v2322_v46 }
 0x689   : > { %v3864_v36 = vpop.eup %3863 }
 0x68a   : > { %3869 = vrcp.f32 %v2325_v55  ;;  %v2323_v34 = vadd.f32 1.0, %v3864_v36 }
 0x68c   : > { %3871 = vrcp.f32 %v2323_v34  ;;  %v3550_v34 = vpop.f32.mrf.mxu1 }
 0x693   : > { %v3866_v61 = vpop.eup %3865 }
 0x694   : > { %v2348_v28 = vmul.f32 %v3964_v31, %v3866_v61 }
 0x695   : > { %v3868_v51 = vpop.eup %3867 }
 0x696   : > { %v2346_v57 = vmul.f32 %v3972_v11, %v3868_v51 }
 0x697   : > { %v3870_v56 = vpop.eup %3869 }
 0x698   : > { %v2349_v32 = vmul.f32 %v3960_v53, %v3870_v56  ;;  %v2147_v56 = vpop.f32.mrf.mxu1 }
 0x699   : > { %v3872_v8 = vpop.eup %3871 }
 0x69a   : > { %v2347_v41 = vmul.f32 %v3968_v13, %v3872_v8  ;;  %v2351_v43 = vpack.c.bf16 %v2349_v32, %v2348_v28  ;;  %v2288_v28 = vmul.f32 %v3550_v34, %v4105_v26  ;;  %v2286_v8 = vmul.f32 %v2147_v56, %v4105_v26 }
 0x69c   : > { %v2350_v6 = vpack.c.bf16 %v2347_v41, %v2346_v57  ;;  %v2296_v41 = vadd.f32 %v2288_v28, %v4808_v45 }
 0x69e   : > { %3560 = vmatprep.mubr.msk.bf16.mxu0 %vm117_vm1, %v2350_v6  ;;  %v3123_v49 = vmul.f32 -1.442695, %v2296_v41 }
 0x69f   : > { %3561 = vmatmul.mubr.msk.bf16.gmra.mxu0 %vm117_vm1, %v2351_v43 }
 0x6a0   : > { %3580 = vmatprep.mubr.bf16.mxu0 %v3841_v52  ;;  %v2294_v52 = vadd.f32 %v2286_v8, %v4815_v7  ;;  %3873 = vpow2.f32 %v3123_v49 }
 0x75f   : > { %v3562_v30 = vpop.f32.mrf.mxu0 }
 0x761   : > { %v2408_v37 = vpop.f32.mrf.mxu0 }
 0x763   : > { %v3563_v15 = vpop.f32.mrf.mxu0 }
 0x764   : > { %v2426_v14 = vpack.c.bf16 %v3563_v15, %v3562_v30  ;;  %v3121_v30 = vmul.f32 -1.442695, %v2294_v52 }
 0x765   : > { %v2411_v5 = vpop.f32.mrf.mxu0 }
 0x766   : > { %v2425_v60 = vpack.c.bf16 %v2411_v5, %v2408_v37  ;;  %3564 = vmatprep.subr.bf16.mxu0 %v2426_v14  ;;  %3875 = vpow2.f32 %v3121_v30 }
 0x767   : > { %3565 = vmatpush3.bf16.msra.mxu0 %v2426_v14 }
 0x768   : > { %3566 = vmatprep.subr.bf16.mxu0 %v2425_v60 }
 0x76b   : > { %3567 = vmatpush3.bf16.msra.mxu0 %v2425_v60 }
 0x76c   : > { %3568 = vmatprep.subr.bf16.mxu0 %v2424_v54 }
 0x76f   : > { %3569 = vmatpush3.bf16.msra.mxu0 %v2424_v54 }
 0x770   : > { %3570 = vmatprep.subr.bf16.mxu0 %v2423_v1 }
 0x773   : > { %3571 = vmatpush3.bf16.msra.mxu0 %v2423_v1 }
 0x774   : > { %3572 = vmatprep.subr.bf16.mxu0 %v2351_v43 }
 0x777   : > { %3573 = vmatpush3.bf16.msra.mxu0 %v2351_v43 }
 0x778   : > { %3574 = vmatprep.subr.bf16.mxu0 %v2350_v6 }
 0x77b   : > { %3575 = vmatpush3.bf16.msra.mxu0 %v2350_v6  ;;  %v3551_v6 = vpop.f32.mrf.mxu1 }
 0x77c   : > { %3576 = vmatprep.subr.bf16.mxu0 %v4609_v9  ;;  %v2289_v37 = vmul.f32 %v3551_v6, %v4105_v26 }
 0x77d   : > { %v2150_v40 = vpop.f32.mrf.mxu1 }
 0x77e   : > { %v2287_v14 = vmul.f32 %v2150_v40, %v4105_v26  ;;  %v2297_v60 = vadd.f32 %v2289_v37, %v4822_v59 }
 0x77f   : > { %3577 = vmatpush3.bf16.msra.mxu0 %v4609_v9  ;;  %v3845_v9 = vld [vmem:[%s4986_s9 + $0x20] sm:$0xff]  }
 0x780   : > { %3578 = vmatprep.subr.bf16.mxu0 %v4604_v4  ;;  %v2295_v54 = vadd.f32 %v2287_v14, %v4828_v58  ;;  %v3124_v7 = vmul.f32 -1.442695, %v2297_v60 }
 0x782   : > { %3877 = vpow2.f32 %v3124_v7 }
 0x783   : > { %3579 = vmatpush3.bf16.msra.mxu0 %v4604_v4  ;;  %v3846_v4 = vld [vmem:[%s4986_s9 + $0x28] sm:$0xff]  }
 0x786   : > { %3581 = vmatmul.mubr.bf16.vlgmr.msra.gmra.mxu0 %v3842_v3 }
 0x787   : > { %3584 = vmatprep.mubr.bf16.mxu0 %v3843_v38  ;;  %v3122_v38 = vmul.f32 -1.442695, %v2295_v54 }
 0x789   : > { %3879 = vpow2.f32 %v3122_v38 }
 0x78e   : > { %3585 = vmatmul.mubr.bf16.gmra.mxu0 %v3844_v48 }
 0x78f   : > { %3588 = vmatprep.mubr.bf16.mxu0 %v3845_v9 }
 0x796   : > { %3589 = vmatmul.mubr.bf16.gmra.mxu0 %v3846_v4 }
 0x797   : > { %3592 = vmatprep.mubr.bf16.mxu0 %v3847_v12  ;;  %v2718_v12 = vld [vmem:[%s4988_s11 + $0x10] sm:$0xff] }
 0x79e   : > { %3593 = vmatmul.mubr.bf16.gmra.mxu0 %v3848_v63 }
 0x79f   : > { %3596 = vmatprep.mubr.bf16.mxu0 %v3849_v33  ;;  %v3874_v33 = vpop.eup %3873 }
 0x7a6   : > { %3597 = vmatmul.mubr.bf16.gmra.mxu0 %v3850_v35  ;;  %v2716_v35 = vld [vmem:[%s4988_s11] sm:$0xff] }
 0x7a7   : > { %3600 = vmatprep.mubr.bf16.mxu0 %v3851_v47 }
 0x7ae   : > { %3601 = vmatmul.mubr.bf16.gmra.mxu0 %v3852_v39 }
 0x7af   : > { %3604 = vmatprep.mubr.bf16.mxu0 %v3853_v17  ;;  %v3876_v17 = vpop.eup %3875 }
 0x7b0   : > { %v2326_v52 = vadd.f32 1.0, %v3876_v17 }
 0x7b6   : > { %3605 = vmatmul.mubr.bf16.gmra.mxu0 %v3854_v44 }
 0x7b7   : > { %3608 = vmatprep.mubr.bf16.mxu0 %v3855_v16  ;;  %v2719_v16 = vld [vmem:[%s4988_s11 + $0x18] sm:$0xff] }
 0x7be   : > { %3609 = vmatmul.mubr.bf16.gmra.mxu0 %v3856_v0 }
 0x846   : > { %v3582_v2 = vpop.f32.mrf.mxu0 }
 0x847   : > { %v2722_v4 = vmul.f32 %v3582_v2, %v4091_v19 }
 0x848   : > { %v2589_v18 = vpop.f32.mrf.mxu0 }
 0x849   : > { %v2720_v59 = vmul.f32 %v2589_v18, %v4091_v19  ;;  %v2726_v44 = vadd.f32 %v2722_v4, %v2718_v12  ;;  %v2328_v18 = vadd.f32 1.0, %v3874_v33 }
 0x84a   : > { %v3583_v50 = vpop.f32.mrf.mxu0 }
 0x84b   : > { %v2723_v47 = vmul.f32 %v3583_v50, %v4091_v19  ;;  %v2724_v28 = vadd.f32 %v2720_v59, %v2716_v35  ;;  %v2717_v50 = vld [vmem:[%s4988_s11 + $0x8] sm:$0xff]  ;;  %v3878_v59 = vpop.eup %3877  ;;  %3881 = vrcp.f32 %v2328_v18 }
 0x84c   : > { %v2592_v46 = vpop.f32.mrf.mxu0  ;;  %3883 = vrcp.f32 %v2326_v52 }
 0x84e   : > { %v3586_v62 = vpop.f32.mrf.mxu0 }
 0x84f   : > { %v2730_v58 = vmul.f32 %v3586_v62, %v4093_v20  ;;  %v2721_v62 = vmul.f32 %v2592_v46, %v4091_v19 }
 0x850   : > { %v2605_v55 = vpop.f32.mrf.mxu0 }
 0x851   : > { %v2728_v0 = vmul.f32 %v2605_v55, %v4093_v20  ;;  %v2734_v8 = vadd.f32 %v2730_v58, %v2726_v44  ;;  %v2727_v55 = vadd.f32 %v2723_v47, %v2719_v16  ;;  %v2725_v14 = vadd.f32 %v2721_v62, %v2717_v50  ;;  %v3880_v16 = vpop.eup %3879 }
 0x852   : > { %v3587_v36 = vpop.f32.mrf.mxu0 }
 0x853   : > { %v2731_v34 = vmul.f32 %v3587_v36, %v4093_v20  ;;  %v2732_v40 = vadd.f32 %v2728_v0, %v2724_v28 }
 0x854   : > { %v2608_v61 = vpop.f32.mrf.mxu0 }
 0x855   : > { %v2735_v60 = vadd.f32 %v2731_v34, %v2727_v55 }
 0x856   : > { %v3590_v51 = vpop.f32.mrf.mxu0 }
 0x857   : > { %v2738_v2 = vmul.f32 %v3590_v51, %v4095_v21  ;;  %v2729_v51 = vmul.f32 %v2608_v61, %v4093_v20 }
 0x858   : > { %v2621_v32 = vpop.f32.mrf.mxu0 }
 0x859   : > { %v2736_v41 = vmul.f32 %v2621_v32, %v4095_v21  ;;  %v2742_v36 = vadd.f32 %v2738_v2, %v2734_v8  ;;  %v2733_v4 = vadd.f32 %v2729_v51, %v2725_v14  ;;  %v2329_v2 = vadd.f32 1.0, %v3878_v59 }
 0x85a   : > { %v3591_v57 = vpop.f32.mrf.mxu0 }
 0x85b   : > { %v2739_v49 = vmul.f32 %v3591_v57, %v4095_v21  ;;  %v2740_v7 = vadd.f32 %v2736_v41, %v2732_v40  ;;  %3885 = vrcp.f32 %v2329_v2 }
 0x85c   : > { %v2624_v43 = vpop.f32.mrf.mxu0 }
 0x85d   : > { %v2737_v54 = vmul.f32 %v2624_v43, %v4095_v21  ;;  %v2743_v12 = vadd.f32 %v2739_v49, %v2735_v60 }
 0x85e   : > { %v3594_v42 = vpop.f32.mrf.mxu0 }
 0x85f   : > { %v2746_v6 = vmul.f32 %v3594_v42, %v4097_v22  ;;  %v2741_v47 = vadd.f32 %v2737_v54, %v2733_v4 }
 0x860   : > { %v2637_v10 = vpop.f32.mrf.mxu0 }
 0x861   : > { %v2744_v30 = vmul.f32 %v2637_v10, %v4097_v22  ;;  %v2750_v38 = vadd.f32 %v2746_v6, %v2742_v36 }
 0x862   : > { %v3595_v15 = vpop.f32.mrf.mxu0 }
 0x863   : > { %v2747_v32 = vmul.f32 %v3595_v15, %v4097_v22  ;;  %v2748_v58 = vadd.f32 %v2744_v30, %v2740_v7  ;;  %v3882_v7 = vpop.eup %3881 }
 0x864   : > { %v2640_v5 = vpop.f32.mrf.mxu0 }
 0x865   : > { %v2745_v33 = vmul.f32 %v2640_v5, %v4097_v22  ;;  %v2751_v17 = vadd.f32 %v2747_v32, %v2743_v12 }
 0x866   : > { %v3598_v45 = vpop.f32.mrf.mxu0 }
 0x867   : > { %v2754_v37 = vmul.f32 %v3598_v45, %v4099_v23  ;;  %v2749_v62 = vadd.f32 %v2745_v33, %v2741_v47  ;;  %v2790_v33 = vmul.f32 %v3964_v31, %v3882_v7 }
 0x868   : > { %v2653_v1 = vpop.f32.mrf.mxu0 }
 0x869   : > { %v2752_v61 = vmul.f32 %v2653_v1, %v4099_v23  ;;  %v2758_v35 = vadd.f32 %v2754_v37, %v2750_v38  ;;  %v3884_v38 = vpop.eup %3883 }
 0x86a   : > { %v3599_v3 = vpop.f32.mrf.mxu0 }
 0x86b   : > { %v2755_v10 = vmul.f32 %v3599_v3, %v4099_v23  ;;  %v2756_v5 = vadd.f32 %v2752_v61, %v2748_v58  ;;  %v3886_v61 = vpop.eup %3885  ;;  %v2788_v58 = vmul.f32 %v3972_v11, %v3884_v38 }
 0x86c   : > { %v2656_v48 = vpop.f32.mrf.mxu0  ;;  %v2791_v47 = vmul.f32 %v3960_v53, %v3886_v61 }
 0x86d   : > { %v2753_v1 = vmul.f32 %v2656_v48, %v4099_v23  ;;  %v2759_v34 = vadd.f32 %v2755_v10, %v2751_v17 }
 0x86e   : > { %v3602_v9 = vpop.f32.mrf.mxu0 }
 0x86f   : > { %v2762_v57 = vmul.f32 %v3602_v9, %v4101_v24  ;;  %v2757_v6 = vadd.f32 %v2753_v1, %v2749_v62 }
 0x870   : > { %v2669_v63 = vpop.f32.mrf.mxu0 }
 0x871   : > { %v2760_v43 = vmul.f32 %v2669_v63, %v4101_v24  ;;  %v2766_v0 = vadd.f32 %v2762_v57, %v2758_v35  ;;  %v2794_v57 = vsub.f32 1.0, %v3882_v7 }
 0x872   : > { %v3603_v39 = vpop.f32.mrf.mxu0 }
 0x873   : > { %v2763_v9 = vmul.f32 %v3603_v39, %v4101_v24  ;;  %v2764_v50 = vadd.f32 %v2760_v43, %v2756_v5  ;;  %v2327_v39 = vadd.f32 1.0, %v3880_v16  ;;  %v2795_v43 = vsub.f32 1.0, %v3886_v61 }
 0x874   : > { %v2672_v56 = vpop.f32.mrf.mxu0 }
 0x875   : > { %v2761_v63 = vmul.f32 %v2672_v56, %v4101_v24  ;;  %v2767_v18 = vadd.f32 %v2763_v9, %v2759_v34 }
 0x876   : > { %v3606_v46 = vpop.f32.mrf.mxu0 }
 0x877   : > { %v2770_v15 = vmul.f32 %v3606_v46, %v4103_v25  ;;  %v2765_v56 = vadd.f32 %v2761_v63, %v2757_v6 }
 0x878   : > { %v2685_v42 = vpop.f32.mrf.mxu0 }
 0x879   : > { %v2768_v3 = vmul.f32 %v2685_v42, %v4103_v25  ;;  %v2774_v8 = vadd.f32 %v2770_v15, %v2766_v0 }
 0x87a   : > { %v3607_v45 = vpop.f32.mrf.mxu0 }
 0x87b   : > { %v2771_v41 = vmul.f32 %v3607_v45, %v4103_v25  ;;  %v2772_v51 = vadd.f32 %v2768_v3, %v2764_v50  ;;  %v2792_v45 = vsub.f32 1.0, %v3884_v38 }
 0x87c   : > { %v2688_v44 = vpop.f32.mrf.mxu0 }
 0x87d   : > { %v2769_v49 = vmul.f32 %v2688_v44, %v4103_v25  ;;  %v2775_v30 = vadd.f32 %v2771_v41, %v2767_v18 }
 0x87e   : > { %v3610_v28 = vpop.f32.mrf.mxu0 }
 0x87f   : > { %v2778_v48 = vmul.f32 %v3610_v28, %v4105_v26  ;;  %v2773_v60 = vadd.f32 %v2769_v49, %v2765_v56  ;;  %v3980_v28 = vmov (%p1505_p1), 0  }
 0x880   : > { %v2701_v55 = vpop.f32.mrf.mxu0  ;;  %3897 = vset.pattern.permute.xlu0 (%p1505_p1), %v3980_v28 }
 0x881   : > { %v2782_v46 = vadd.f32 %v2778_v48, %v2774_v8  ;;  %v2776_v40 = vmul.f32 %v2701_v55, %v4105_v26 }
 0x882   : > { %v3611_v36 = vpop.f32.mrf.mxu0 }
 0x883   : > { %3887 = vtanh.f32 %v2782_v46  ;;  %v2780_v37 = vadd.f32 %v2776_v40, %v2772_v51  ;;  %v2779_v14 = vmul.f32 %v3611_v36, %v4105_v26 }
 0x884   : > { %3889 = vrcp.f32 %v2327_v39  ;;  %v2704_v52 = vpop.f32.mrf.mxu0 }
 0x885   : > { %3891 = vtanh.f32 %v2780_v37  ;;  %v2783_v54 = vadd.f32 %v2779_v14, %v2775_v30  ;;  %v2777_v32 = vmul.f32 %v2704_v52, %v4105_v26 }
 0x887   : > { %3893 = vtanh.f32 %v2783_v54  ;;  %v2781_v42 = vadd.f32 %v2777_v32, %v2773_v60 }
 0x889   : > { %3895 = vtanh.f32 %v2781_v42 }
 0x890   : > { %v3888_v4 = vpop.eup %3887 }
 0x891   : > { %v3890_v12 = vpop.eup %3889  ;;  %v2798_v10 = vmul.f32 %v3888_v4, %v2794_v57 }
 0x892   : > { %v3892_v59 = vpop.eup %3891  ;;  %v2793_v1 = vsub.f32 1.0, %v3890_v12  ;;  %v2789_v44 = vmul.f32 %v3968_v13, %v3890_v12 }
 0x893   : > { %v2802_v31 = vadd.f32 %v2798_v10, %v2790_v33   ;;  %v2796_v35 = vmul.f32 %v3892_v59, %v2792_v45 }
 0x894   : > { %v3894_v15 = vpop.eup %3893 }
 0x895   : > { %2806 = vst.msk [vmem:[%s4598_s4 + $0x10] sm:$0xff] %vm117_vm1, %v2802_v31  ;;  %v2800_v11 = vadd.f32 %v2796_v35, %v2788_v58   ;;  %v2799_v17 = vmul.f32 %v3894_v15, %v2795_v43 }
 0x896   : > { %v3896_v9 = vpop.eup %3895 }
 0x897   : > { %2804 = vst.msk [vmem:[%s4598_s4] sm:$0xff] %vm117_vm1, %v2800_v11  ;;  %v2803_v53 = vadd.f32 %v2799_v17, %v2791_v47   ;;  %v2797_v16 = vmul.f32 %v3896_v9, %v2793_v1  ;;  %1507 = sbr.rel (!%p1505_p1) target bundleno = 1102 (0x44e), region = 105 }
 0x899   : > { %2807 = vst.msk [vmem:[%s4598_s4 + $0x18] sm:$0xff] %vm117_vm1, %v2803_v53  ;;  %v2801_v13 = vadd.f32 %v2797_v16, %v2789_v44   ;;  %v2857_v53 = vld [vmem:[%s4990_s13] sm:$0xf] (%p1505_p1) }
 0x89a   :  { %2860 = vperm.xlu0 (%p1505_p1), %3897, %v2857_v53  }
 0x89b   : > { %2805 = vst.msk [vmem:[%s4598_s4 + $0x8] sm:$0xff] %vm117_vm1, %v2801_v13  ;;  %v3145_v13 = vld.sshfl [vmem:[%s4989_s12] sm:$0x33 pattern:$0x76325410] (%p1505_p1) }
 0x89c   :  { %v2871_v31 = vcombine.high %v3145_v13, %v3145_v13 }
 0x89e   :  { %2906 = vmatprep.mubr.bf16.mxu0 %v2871_v31 }
 0x8a2   :  { %v2838_v5 = vld [vmem:[#allocation2 + $0xf0] sm:$0xff]  ;;  %v2839_v0 = vld [vmem:[#allocation2 + $0xf8] sm:$0xff]  ;;  %v2836_v34 = vld [vmem:[#allocation2 + $0xe0] sm:$0xff] }
 0x8a3   :  { %v2822_v3 = vld [vmem:[#allocation2 + $0x70] sm:$0xff]  ;;  %v2855_v2 = vpack.c.bf16 %v2839_v0, %v2838_v5  ;;  %v2823_v62 = vld [vmem:[#allocation2 + $0x78] sm:$0xff]  ;;  %v2837_v63 = vld [vmem:[#allocation2 + $0xe8] sm:$0xff] }
 0x8a4   :  { %v2847_v50 = vpack.c.bf16 %v2823_v62, %v2822_v3  ;;  %v2854_v8 = vpack.c.bf16 %v2837_v63, %v2836_v34  ;;  %v2820_v41 = vld [vmem:[#allocation2 + $0x60] sm:$0xff]  ;;  %v2821_v48 = vld [vmem:[#allocation2 + $0x68] sm:$0xff]  ;;  %v2834_v39 = vld [vmem:[#allocation2 + $0xd0] sm:$0xff] }
 0x8a5   :  { %3290 = vmatprep.subr.bf16.mxu0 %v2855_v2  ;;  %v2835_v6 = vld [vmem:[#allocation2 + $0xd8] sm:$0xff]  ;;  %v2846_v11 = vpack.c.bf16 %v2821_v48, %v2820_v41  ;;  %v2818_v19 = vld [vmem:[#allocation2 + $0x50] sm:$0xff]  ;;  %v2832_v21 = vld [vmem:[#allocation2 + $0xc0] sm:$0xff] }
 0x8a6   :  { %3291 = vmatpush3.bf16.msra.mxu0 %v2847_v50  ;;  %v2853_v18 = vpack.c.bf16 %v2835_v6, %v2834_v39  ;;  %v2819_v20 = vld [vmem:[#allocation2 + $0x58] sm:$0xff]  ;;  %v2833_v22 = vld [vmem:[#allocation2 + $0xc8] sm:$0xff]  ;;  %v2816_v25 = vld [vmem:[#allocation2 + $0x40] sm:$0xff] }
 0x8a7   :  { %3292 = vmatprep.subr.bf16.mxu0 %v2854_v8  ;;  %v2845_v23 = vpack.c.bf16 %v2819_v20, %v2818_v19  ;;  %v2852_v24 = vpack.c.bf16 %v2833_v22, %v2832_v21  ;;  %v2817_v26 = vld [vmem:[#allocation2 + $0x48] sm:$0xff]  ;;  %v2830_v27 = vld [vmem:[#allocation2 + $0xb0] sm:$0xff]  ;;  %v2831_v29 = vld [vmem:[#allocation2 + $0xb8] sm:$0xff] }
 0x8a8   :  { %v2844_v55 = vpack.c.bf16 %v2817_v26, %v2816_v25  ;;  %v2851_v51 = vpack.c.bf16 %v2831_v29, %v2830_v27  ;;  %v2814_v49 = vld [vmem:[#allocation2 + $0x30] sm:$0xff]  ;;  %v2815_v46 = vld [vmem:[#allocation2 + $0x38] sm:$0xff]  ;;  %v2828_v40 = vld [vmem:[#allocation2 + $0xa0] sm:$0xff] }
 0x8a9   :  { %v2829_v56 = vld [vmem:[#allocation2 + $0xa8] sm:$0xff]  ;;  %v2843_v36 = vpack.c.bf16 %v2815_v46, %v2814_v49  ;;  %v2812_v37 = vld [vmem:[#allocation2 + $0x20] sm:$0xff]  ;;  %v2826_v52 = vld [vmem:[#allocation2 + $0x90] sm:$0xff] }
 0x8aa   :  { %3293 = vmatpush3.bf16.msra.mxu0 %v2846_v11  ;;  %v2850_v30 = vpack.c.bf16 %v2829_v56, %v2828_v40  ;;  %v2813_v14 = vld [vmem:[#allocation2 + $0x28] sm:$0xff]  ;;  %v2827_v60 = vld [vmem:[#allocation2 + $0x98] sm:$0xff]  ;;  %v2810_v42 = vld [vmem:[#allocation2 + $0x10] sm:$0xff] }
 0x8ab   :  { %3294 = vmatprep.subr.bf16.mxu0 %v2853_v18  ;;  %v2842_v54 = vpack.c.bf16 %v2813_v14, %v2812_v37  ;;  %v2849_v32 = vpack.c.bf16 %v2827_v60, %v2826_v52  ;;  %v2811_v7 = vld [vmem:[#allocation2 + $0x18] sm:$0xff]  ;;  %v2824_v38 = vld [vmem:[#allocation2 + $0x80] sm:$0xff]  ;;  %v2825_v61 = vld [vmem:[#allocation2 + $0x88] sm:$0xff] }
 0x8ac   :  { %v2841_v57 = vpack.c.bf16 %v2811_v7, %v2810_v42  ;;  %v2848_v4 = vpack.c.bf16 %v2825_v61, %v2824_v38  ;;  %v2808_v12 = vld [vmem:[#allocation2] sm:$0xff]  ;;  %v2809_v33 = vld [vmem:[#allocation2 + $0x8] sm:$0xff] }
 0x8ad   :  { %v2840_v10 = vpack.c.bf16 %v2809_v33, %v2808_v12 }
 0x8ae   :  { %3295 = vmatpush3.bf16.msra.mxu0 %v2845_v23 }
 0x8af   :  { %3296 = vmatprep.subr.bf16.mxu0 %v2852_v24 }
 0x8b2   :  { %3297 = vmatpush3.bf16.msra.mxu0 %v2844_v55 }
 0x8b3   :  { %3298 = vmatprep.subr.bf16.mxu0 %v2851_v51 }
 0x8b6   :  { %3299 = vmatpush3.bf16.msra.mxu0 %v2843_v36 }
 0x8b7   :  { %3300 = vmatprep.subr.bf16.mxu0 %v2850_v30 }
 0x8ba   :  { %3301 = vmatpush3.bf16.msra.mxu0 %v2842_v54 }
 0x8bb   :  { %3302 = vmatprep.subr.bf16.mxu0 %v2849_v32 }
 0x8be   :  { %3303 = vmatpush3.bf16.msra.mxu0 %v2841_v57 }
 0x8bf   :  { %3304 = vmatprep.subr.bf16.mxu0 %v2848_v4 }
 0x8c2   :  { %3305 = vmatpush3.bf16.msra.mxu0 %v2840_v10 }
 0x8c5   :  { %2907 = vmatmul.mubr.bf16.vlgmr.msra.gmra.mxu0 %v3145_v13 }
 0x915   :  { %v2861_v58 = vpop.permute.xlu0 %2860 }
 0x985   :  { %v3306_v45 = vpop.f32.mrf.mxu0 }
 0x987   :  { %v3307_v59 = vpop.f32.mrf.mxu0 }
 0x988   :  { %v3308_v35 = vadd.f32 %v3307_v59, %v3306_v45 }
 0x989   :  { %v3309_v43 = vpop.f32.mrf.mxu0 }
 0x98a   :  { %v2909_v15 = vadd.f32 %v3308_v35, %v2861_v58 }
 0x98b   :  { %v3310_v47 = vpop.f32.mrf.mxu0 }
 0x98c   :  { %2915 = vst.msk [vmem:[%s4991_s14] sm:$0xf] %vm2914_vm4, %v2909_v15 }

</bundles_post_ra>
